<compile_context>
chip_gen: v7x
topology: tpu7x:2x2x1
jax: 0.10.0
libtpu: 0.0.40
codegen_flags: <defaults>
</compile_context>

<pallas_src>
import functools

import jax
import jax.numpy as jnp
from jax.experimental import pallas as pl
from jax.experimental.pallas import tpu as pltpu

LANE = 128   # lane width (last dim)
SUB = 8      # f32 sublane granularity
TM = 512     # fused_mlp row tile


# ------------------------------- helpers ----------------------------------- #

def _ceil_to(x, m):
    return ((x + m - 1) // m) * m


def _pad_rows(n):
    """Row padding: 128-aligned (lane-dense when used as a one-hot lane dim),
    512-aligned beyond 512 so the fused_mlp row tile divides evenly."""
    n = _ceil_to(max(n, 1), LANE)
    if n > TM:
        n = _ceil_to(n, TM)
    return n


def _pad2(a, rows, cols):
    r, c = a.shape
    return jnp.pad(a, ((0, rows - r), (0, cols - c)))


def _prep_linear(w, b, scale=1.0, shift=0.0, dtype=jnp.bfloat16):
    """Zero-pad a Linear to 128-lane-aligned shapes and fold an affine
    (scale, shift) -- used for eval-mode BatchNorm."""
    fan_in, fan_out = w.shape
    wp = jnp.zeros((_ceil_to(fan_in, LANE), _ceil_to(fan_out, LANE)), jnp.float32)
    wp = wp.at[:fan_in, :fan_out].set(w * scale)
    bp = jnp.zeros((1, _ceil_to(fan_out, LANE)), jnp.float32)
    bp = bp.at[0, :fan_out].set(b * scale + shift)
    return wp.astype(dtype), bp


# ----------------------------- encoder MLP kernel -------------------------- #

def _mlp_stack_kernel(x_ref, *rest, n_layers):
    """Fused stack of (Linear + ReLU) layers.  rest = (w0,b0,...,w_{L-1},b_{L-1}, o)."""
    o_ref = rest[-1]
    h = x_ref[...]
    for i in range(n_layers):
        w = rest[2 * i][...]        # bf16 (in_pad, out_pad)
        b = rest[2 * i + 1][...]    # f32  (1, out_pad)
        h = jnp.dot(h.astype(jnp.bfloat16), w,
                    preferred_element_type=jnp.float32) + b
        h = jnp.maximum(h, 0.0)
    o_ref[...] = h


def fused_mlp(x, wbs):
    """x: (rows_pad, in_pad) f32; wbs: list of (w_bf16, b_f32) padded params."""
    rows, in_dim = x.shape
    out_dim = wbs[-1][1].shape[1]
    n_layers = len(wbs)
    tm = rows if rows <= TM else TM
    assert rows % tm == 0

    in_specs = [pl.BlockSpec((tm, in_dim), lambda i: (i, 0))]
    flat = []
    for (w, b) in wbs:
        in_specs.append(pl.BlockSpec(w.shape, lambda i: (0, 0)))
        in_specs.append(pl.BlockSpec(b.shape, lambda i: (0, 0)))
        flat += [w, b]

    return pl.pallas_call(
        functools.partial(_mlp_stack_kernel, n_layers=n_layers),
        out_shape=jax.ShapeDtypeStruct((rows, out_dim), jnp.float32),
        grid=(rows // tm,),
        in_specs=in_specs,
        out_specs=pl.BlockSpec((tm, out_dim), lambda i: (i, 0)),
        compiler_params=pltpu.CompilerParams(
            dimension_semantics=("parallel",)),
    )(x, *flat)


# ------------------------ fused GNN core (convs+pool+head) ----------------- #

def _gnn_core_kernel(h_ref, e_ref, src_oh_ref, dstw_ref, pool_oh_ref, *rest,
                     n_conv):
    """Fused: n_conv x [GINEConv (eps=0) + GIN MLP + folded BN (+ ReLU)]
    + global_add_pool + 2-layer output head.

    rest = [w1,b1,w2,b2]*n_conv + [ow1,ob1,ow2,ob2] + [node_out_ref, z_ref].
    All gather/scatter/pool reductions are MXU matmuls against masked one-hot
    matrices built in the wrapper (padded rows/edges contribute exactly zero).
    """
    node_out_ref, z_ref = rest[-2], rest[-1]
    params = rest[:-2]

    h = h_ref[...]          # (N_pad, D_pad) f32
    e = e_ref[...]          # (E_pad, D_pad) f32
    src_oh = src_oh_ref[...]    # (E_pad, N_pad) f32, one-hot of src (padded edges = 0)
    dstw = dstw_ref[...]        # (N_pad, E_pad) f32, one-hot of dst * edge_weight

    for i in range(n_conv):
        w1 = params[4 * i][...]        # f32 (D_pad, H_pad)
        b1 = params[4 * i + 1][...]
        w2 = params[4 * i + 2][...]    # f32 (H_pad, D_pad), BN folded
        b2 = params[4 * i + 3][...]
        # gather x_j for every edge (vectorized, MXU)
        h_src = jnp.dot(src_oh, h, preferred_element_type=jnp.float32)
        msgs = jnp.maximum(h_src + e, 0.0)                    # relu(x_j + e)
        # scatter-add edge_weight * msg into destination nodes (MXU);
        # (1 + eps) * x_i with eps = 0
        agg = h + jnp.dot(dstw, msgs, preferred_element_type=jnp.float32)
        hmid = jnp.maximum(
            jnp.dot(agg, w1, preferred_element_type=jnp.float32) + b1, 0.0)
        h = jnp.dot(hmid, w2, preferred_element_type=jnp.float32) + b2
        if i != n_conv - 1:
            h = jnp.maximum(h, 0.0)
        # TODO(synk): F.dropout is identity here (eval mode assumed).

    node_out_ref[...] = h

    # global_add_pool: (G_pad, N_pad) one-hot of batch-id (padded nodes = 0)
    pooled = jnp.dot(pool_oh_ref[...], h, preferred_element_type=jnp.float32)
    ow1 = params[4 * n_conv][...]
    ob1 = params[4 * n_conv + 1][...]
    ow2 = params[4 * n_conv + 2][...]
    ob2 = params[4 * n_conv + 3][...]
    t = jnp.maximum(
        jnp.dot(pooled, ow1, preferred_element_type=jnp.float32) + ob1, 0.0)
    z_ref[...] = jnp.dot(t, ow2, preferred_element_type=jnp.float32) + ob2


def gnn_core(h, e, src_oh, dstw, pool_oh, conv_params, out_params):
    n_pad, d_pad = h.shape
    g_pad = pool_oh.shape[0]
    out_pad = out_params[-1][1].shape[1]
    n_conv = len(conv_params)

    flat = []
    for p in conv_params:
        flat += list(p)
    for p in out_params:
        flat += list(p)

    vmem = lambda: pl.BlockSpec(memory_space=pltpu.MemorySpace.VMEM)
    n_in = 5 + len(flat)
    # TODO(synk): for large graphs, tile the node axis (accumulator pattern /
    #   scalar-prefetched segment offsets) instead of keeping the (E,N) one-hot
    #   fully resident, and add a 2-way 'parallel' edge split for v7x megacore.
    return pl.pallas_call(
        functools.partial(_gnn_core_kernel, n_conv=n_conv),
        out_shape=(jax.ShapeDtypeStruct((n_pad, d_pad), jnp.float32),
                   jax.ShapeDtypeStruct((g_pad, out_pad), jnp.float32)),
        in_specs=[vmem() for _ in range(n_in)],
        out_specs=(vmem(), vmem()),
        compiler_params=pltpu.CompilerParams(
            vmem_limit_bytes=48 * 1024 * 1024),
    )(h, e, src_oh, dstw, pool_oh, *flat)


# --------------------------------- forward --------------------------------- #

def featured_transfer_forward(pp, batch, x, edge_index, edge_attr,
                              edge_weight=None, *, features=False,
                              num_graphs=1, proj_dim=16, out_dim=16):
    n_nodes = x.shape[0]
    n_edges = edge_index.shape[1]

    if not features:
        x = jnp.ones_like(x)
    # x.to(torch.int) / edge_attr.to(torch.int), then .float() inside encoders
    h0 = x.astype(jnp.int32).astype(jnp.float32)
    e0 = edge_attr.astype(jnp.int32).astype(jnp.float32)

    n_pad = _pad_rows(n_nodes)
    e_pad = _pad_rows(n_edges)
    h0p = _pad2(h0, n_pad, _ceil_to(h0.shape[1], LANE))
    e0p = _pad2(e0, e_pad, _ceil_to(e0.shape[1], LANE))

    # fused (Linear+ReLU)^3 encoder heads
    h = fused_mlp(h0p, pp["atom_encoder"])   # (n_pad, D_pad) f32
    e = fused_mlp(e0p, pp["bond_encoder"])   # (e_pad, D_pad) f32

    src = edge_index[0].astype(jnp.int32)
    dst = edge_index[1].astype(jnp.int32)
    if edge_weight is None:
        ew = jnp.ones((n_edges,), jnp.float32)
    else:
        ew = edge_weight.reshape(-1).astype(jnp.float32)

    # Masked one-hot matrices (padded nodes/edges contribute exactly zero).
    src_pad = jnp.full((e_pad,), -1, jnp.int32).at[:n_edges].set(src)
    dst_pad = jnp.full((e_pad,), -1, jnp.int32).at[:n_edges].set(dst)
    ew_pad = jnp.zeros((e_pad,), jnp.float32).at[:n_edges].set(ew)
    n_ids = jnp.arange(n_pad, dtype=jnp.int32)
    src_oh = (src_pad[:, None] == n_ids[None, :]).astype(jnp.float32)   # (E,N)
    dstw = ((n_ids[:, None] == dst_pad[None, :]).astype(jnp.float32)
            * ew_pad[None, :])                                          # (N,E)

    g_pad = _ceil_to(max(num_graphs, SUB), SUB)
    batch_pad = jnp.full((n_pad,), -1, jnp.int32).at[:n_nodes].set(
        batch.astype(jnp.int32))
    pool_oh = (jnp.arange(g_pad, dtype=jnp.int32)[:, None]
               == batch_pad[None, :]).astype(jnp.float32)               # (G,N)

    node_out, z = gnn_core(h, e, src_oh, dstw, pool_oh,
                           pp["convs"], pp["output_layer"])

    node_emb = node_out[:n_nodes, :proj_dim]
    return z[:num_graphs, :out_dim], node_emb


# ------------------------------ parameter init ----------------------------- #

def xavier_uniform(key, fan_in, fan_out):
    a = (6.0 / (fan_in + fan_out)) ** 0.5
    # stored as (in, out) so the kernel computes x @ W
    return jax.random.uniform(key, (fan_in, fan_out), jnp.float32, -a, a)


def head_layer_sizes(emb_dim, feat_dim, n_layers):
    spread = [min(emb_dim, feat_dim) + abs(feat_dim - emb_dim) * i
              for i in range(n_layers - 1)]
    return [feat_dim] + spread + [emb_dim]


# ----------------------------------- main ----------------------------------- #

if __name__ == "__main__":
    # small synthetic graph batch
    N_NODES, N_EDGES, N_GRAPHS = 16, 24, 2
    NODE_FEAT_DIM, EDGE_FEAT_DIM = 32, 32
    PROJ_HIDDEN_DIM, OUTPUT_DIM = 16, 16
    NUM_GC_LAYERS, INPUT_HEAD_LAYERS = 2, 3

    key = jax.random.PRNGKey(0)
    keys = iter(jax.random.split(key, 64))

    def lin_params(fan_in, fan_out):
        # init_emb(): xavier_uniform weights, zero biases for every Linear
        return (xavier_uniform(next(keys), fan_in, fan_out),
                jnp.zeros((fan_out,), jnp.float32))

    atom_sizes = head_layer_sizes(PROJ_HIDDEN_DIM, NODE_FEAT_DIM, INPUT_HEAD_LAYERS)
    bond_sizes = head_layer_sizes(PROJ_HIDDEN_DIM, EDGE_FEAT_DIM, INPUT_HEAD_LAYERS)

    raw = {
        "atom_encoder": [lin_params(atom_sizes[i], atom_sizes[i + 1])
                         for i in range(INPUT_HEAD_LAYERS)],
        "bond_encoder": [lin_params(bond_sizes[i], bond_sizes[i + 1])
                         for i in range(INPUT_HEAD_LAYERS)],
        "convs": [lin_params(PROJ_HIDDEN_DIM, 2 * PROJ_HIDDEN_DIM)
                  + lin_params(2 * PROJ_HIDDEN_DIM, PROJ_HIDDEN_DIM)
                  for _ in range(NUM_GC_LAYERS)],
        "output_layer": [lin_params(PROJ_HIDDEN_DIM, PROJ_HIDDEN_DIM),
                         lin_params(PROJ_HIDDEN_DIM, OUTPUT_DIM)],
    }

    # Eval-mode BatchNorm1d with default (untrained) running stats folds to a
    # single scale on the second GIN-MLP linear.
    # TODO(synk): for trained checkpoints fold per-channel
    #             (x - mean) * gamma / sqrt(var + eps) + beta into w2 / b2.
    bn_scale = 1.0 / (1.0 + 1e-5) ** 0.5

    f32 = jnp.float32
    pp = {
        "atom_encoder": [_prep_linear(w, b) for (w, b) in raw["atom_encoder"]],
        "bond_encoder": [_prep_linear(w, b) for (w, b) in raw["bond_encoder"]],
        "convs": [_prep_linear(w1, b1, dtype=f32)
                  + _prep_linear(w2, b2, scale=bn_scale, dtype=f32)
                  for (w1, b1, w2, b2) in raw["convs"]],
        "output_layer": [_prep_linear(w, b, dtype=f32)
                         for (w, b) in raw["output_layer"]],
    }

    kx, ke, ki = jax.random.split(jax.random.PRNGKey(1), 3)
    x = jax.random.normal(kx, (N_NODES, NODE_FEAT_DIM), jnp.float32)
    edge_attr = jax.random.uniform(ke, (N_EDGES, EDGE_FEAT_DIM), jnp.float32,
                                   0.0, 4.0)
    edge_index = jax.random.randint(ki, (2, N_EDGES), 0, N_NODES, jnp.int32)
    batch = jnp.repeat(jnp.arange(N_GRAPHS, dtype=jnp.int32),
                       N_NODES // N_GRAPHS)

    fwd = jax.jit(functools.partial(
        featured_transfer_forward, features=False, num_graphs=N_GRAPHS,
        proj_dim=PROJ_HIDDEN_DIM, out_dim=OUTPUT_DIM))

    z, node_emb = fwd(pp, batch, x, edge_index, edge_attr)
    jax.block_until_ready((z, node_emb))

    assert z.shape == (N_GRAPHS, OUTPUT_DIM)
    assert node_emb.shape == (N_NODES, PROJ_HIDDEN_DIM)
    print("KERNEL_OK")
</pallas_src>

<mosaic_0001>
module attributes {stable_mosaic.version = 11 : i64} {
  func.func @_mlp_stack_kernel(%arg0: i32, %arg1: memref<128x128xf32, #tpu.memory_space<vmem>>, %arg2: memref<128x128xbf16, #tpu.memory_space<vmem>>, %arg3: memref<1x128xf32, #tpu.memory_space<vmem>>, %arg4: memref<128x128xbf16, #tpu.memory_space<vmem>>, %arg5: memref<1x128xf32, #tpu.memory_space<vmem>>, %arg6: memref<128x128xbf16, #tpu.memory_space<vmem>>, %arg7: memref<1x128xf32, #tpu.memory_space<vmem>>, %arg8: memref<128x128xf32, #tpu.memory_space<vmem>>) attributes {dimension_semantics = [#tpu.dimension_semantics<parallel>], iteration_bounds = array<i64: 1>, scalar_prefetch = 0 : i64, scratch_operands = 0 : i64, tpu.core_type = #tpu.core_type<tc>, window_params = [{transform_indices = @transform_0, window_bounds = array<i64: 128, 128>}, {pipeline_mode = #tpu.pipeline_mode<synchronous>, transform_indices = @transform_1, window_bounds = array<i64: 128, 128>}, {pipeline_mode = #tpu.pipeline_mode<synchronous>, transform_indices = @transform_2, window_bounds = array<i64: 1, 128>}, {pipeline_mode = #tpu.pipeline_mode<synchronous>, transform_indices = @transform_3, window_bounds = array<i64: 128, 128>}, {pipeline_mode = #tpu.pipeline_mode<synchronous>, transform_indices = @transform_4, window_bounds = array<i64: 1, 128>}, {pipeline_mode = #tpu.pipeline_mode<synchronous>, transform_indices = @transform_5, window_bounds = array<i64: 128, 128>}, {pipeline_mode = #tpu.pipeline_mode<synchronous>, transform_indices = @transform_6, window_bounds = array<i64: 1, 128>}, {transform_indices = @transform_7, window_bounds = array<i64: 128, 128>}]} {
    %c0 = arith.constant 0 : index
    %c0_0 = arith.constant 0 : index
    %0 = vector.load %arg1[%c0, %c0_0] : memref<128x128xf32, #tpu.memory_space<vmem>>, vector<128x128xf32>
    %c0_1 = arith.constant 0 : index
    %c0_2 = arith.constant 0 : index
    %1 = vector.load %arg2[%c0_1, %c0_2] : memref<128x128xbf16, #tpu.memory_space<vmem>>, vector<128x128xbf16>
    %c0_3 = arith.constant 0 : index
    %c0_4 = arith.constant 0 : index
    %2 = vector.load %arg3[%c0_3, %c0_4] : memref<1x128xf32, #tpu.memory_space<vmem>>, vector<1x128xf32>
    %3 = arith.truncf %0 : vector<128x128xf32> to vector<128x128xbf16>
    %cst = arith.constant dense<0.000000e+00> : vector<128x128xf32>
    %4 = tpu.matmul %3, %1, %cst {dimension_numbers = #tpu.dot_dimension_numbers<[1], [0], [0], [1], [0, 0, 1, 1], [], []>} : vector<128x128xbf16>, vector<128x128xbf16>, vector<128x128xf32> -> vector<128x128xf32>
    %5 = vector.broadcast %2 : vector<1x128xf32> to vector<128x128xf32>
    %6 = arith.addf %4, %5 : vector<128x128xf32>
    %cst_5 = arith.constant 0.000000e+00 : f32
    %7 = vector.broadcast %cst_5 : f32 to vector<128x128xf32>
    %8 = arith.maximumf %6, %7 : vector<128x128xf32>
    %c0_6 = arith.constant 0 : index
    %c0_7 = arith.constant 0 : index
    %9 = vector.load %arg4[%c0_6, %c0_7] : memref<128x128xbf16, #tpu.memory_space<vmem>>, vector<128x128xbf16>
    %c0_8 = arith.constant 0 : index
    %c0_9 = arith.constant 0 : index
    %10 = vector.load %arg5[%c0_8, %c0_9] : memref<1x128xf32, #tpu.memory_space<vmem>>, vector<1x128xf32>
    %11 = arith.truncf %8 : vector<128x128xf32> to vector<128x128xbf16>
    %cst_10 = arith.constant dense<0.000000e+00> : vector<128x128xf32>
    %12 = tpu.matmul %11, %9, %cst_10 {dimension_numbers = #tpu.dot_dimension_numbers<[1], [0], [0], [1], [0, 0, 1, 1], [], []>} : vector<128x128xbf16>, vector<128x128xbf16>, vector<128x128xf32> -> vector<128x128xf32>
    %13 = vector.broadcast %10 : vector<1x128xf32> to vector<128x128xf32>
    %14 = arith.addf %12, %13 : vector<128x128xf32>
    %cst_11 = arith.constant 0.000000e+00 : f32
    %15 = vector.broadcast %cst_11 : f32 to vector<128x128xf32>
    %16 = arith.maximumf %14, %15 : vector<128x128xf32>
    %c0_12 = arith.constant 0 : index
    %c0_13 = arith.constant 0 : index
    %17 = vector.load %arg6[%c0_12, %c0_13] : memref<128x128xbf16, #tpu.memory_space<vmem>>, vector<128x128xbf16>
    %c0_14 = arith.constant 0 : index
    %c0_15 = arith.constant 0 : index
    %18 = vector.load %arg7[%c0_14, %c0_15] : memref<1x128xf32, #tpu.memory_space<vmem>>, vector<1x128xf32>
    %19 = arith.truncf %16 : vector<128x128xf32> to vector<128x128xbf16>
    %cst_16 = arith.constant dense<0.000000e+00> : vector<128x128xf32>
    %20 = tpu.matmul %19, %17, %cst_16 {dimension_numbers = #tpu.dot_dimension_numbers<[1], [0], [0], [1], [0, 0, 1, 1], [], []>} : vector<128x128xbf16>, vector<128x128xbf16>, vector<128x128xf32> -> vector<128x128xf32>
    %21 = vector.broadcast %18 : vector<1x128xf32> to vector<128x128xf32>
    %22 = arith.addf %20, %21 : vector<128x128xf32>
    %cst_17 = arith.constant 0.000000e+00 : f32
    %23 = vector.broadcast %cst_17 : f32 to vector<128x128xf32>
    %24 = arith.maximumf %22, %23 : vector<128x128xf32>
    %c0_18 = arith.constant 0 : index
    %c0_19 = arith.constant 0 : index
    %25 = vector.load %arg8[%c0_18, %c0_19] : memref<128x128xf32, #tpu.memory_space<vmem>>, vector<128x128xf32>
    tpu.vector_store %arg8[%c0_18, %c0_19], %24 {strides = array<i32>} : memref<128x128xf32, #tpu.memory_space<vmem>>, vector<128x128xf32>,
    return
  }
  func.func @transform_0(%arg0: i32) -> (i32, i32) {
    %c0_i32 = arith.constant 0 : i32
    %c0_i32_0 = arith.constant 0 : i32
    return %arg0, %c0_i32 : i32, i32
  }
  func.func @transform_1(%arg0: i32) -> (i32, i32) {
    %c0_i32 = arith.constant 0 : i32
    %c0_i32_0 = arith.constant 0 : i32
    %c0_i32_1 = arith.constant 0 : i32
    return %c0_i32, %c0_i32_0 : i32, i32
  }
  func.func @transform_2(%arg0: i32) -> (i32, i32) {
    %c0_i32 = arith.constant 0 : i32
    %c0_i32_0 = arith.constant 0 : i32
    %c0_i32_1 = arith.constant 0 : i32
    return %c0_i32, %c0_i32_0 : i32, i32
  }
  func.func @transform_3(%arg0: i32) -> (i32, i32) {
    %c0_i32 = arith.constant 0 : i32
    %c0_i32_0 = arith.constant 0 : i32
    %c0_i32_1 = arith.constant 0 : i32
    return %c0_i32, %c0_i32_0 : i32, i32
  }
  func.func @transform_4(%arg0: i32) -> (i32, i32) {
    %c0_i32 = arith.constant 0 : i32
    %c0_i32_0 = arith.constant 0 : i32
    %c0_i32_1 = arith.constant 0 : i32
    return %c0_i32, %c0_i32_0 : i32, i32
  }
  func.func @transform_5(%arg0: i32) -> (i32, i32) {
    %c0_i32 = arith.constant 0 : i32
    %c0_i32_0 = arith.constant 0 : i32
    %c0_i32_1 = arith.constant 0 : i32
    return %c0_i32, %c0_i32_0 : i32, i32
  }
  func.func @transform_6(%arg0: i32) -> (i32, i32) {
    %c0_i32 = arith.constant 0 : i32
    %c0_i32_0 = arith.constant 0 : i32
    %c0_i32_1 = arith.constant 0 : i32
    return %c0_i32, %c0_i32_0 : i32, i32
  }
  func.func @transform_7(%arg0: i32) -> (i32, i32) {
    %c0_i32 = arith.constant 0 : i32
    %c0_i32_0 = arith.constant 0 : i32
    return %arg0, %c0_i32 : i32, i32
  }
}

module attributes {stable_mosaic.version = 11 : i64} {
  func.func @_gnn_core_kernel(%arg0: memref<128x128xf32, #tpu.memory_space<vmem>>, %arg1: memref<128x128xf32, #tpu.memory_space<vmem>>, %arg2: memref<128x128xf32, #tpu.memory_space<vmem>>, %arg3: memref<128x128xf32, #tpu.memory_space<vmem>>, %arg4: memref<8x128xf32, #tpu.memory_space<vmem>>, %arg5: memref<128x128xf32, #tpu.memory_space<vmem>>, %arg6: memref<1x128xf32, #tpu.memory_space<vmem>>, %arg7: memref<128x128xf32, #tpu.memory_space<vmem>>, %arg8: memref<1x128xf32, #tpu.memory_space<vmem>>, %arg9: memref<128x128xf32, #tpu.memory_space<vmem>>, %arg10: memref<1x128xf32, #tpu.memory_space<vmem>>, %arg11: memref<128x128xf32, #tpu.memory_space<vmem>>, %arg12: memref<1x128xf32, #tpu.memory_space<vmem>>, %arg13: memref<128x128xf32, #tpu.memory_space<vmem>>, %arg14: memref<1x128xf32, #tpu.memory_space<vmem>>, %arg15: memref<128x128xf32, #tpu.memory_space<vmem>>, %arg16: memref<1x128xf32, #tpu.memory_space<vmem>>, %arg17: memref<128x128xf32, #tpu.memory_space<vmem>>, %arg18: memref<8x128xf32, #tpu.memory_space<vmem>>) attributes {dimension_semantics = [], scalar_prefetch = 0 : i64, scratch_operands = 0 : i64, tpu.core_type = #tpu.core_type<tc>} {
    %c0 = arith.constant 0 : index
    %c0_0 = arith.constant 0 : index
    %0 = vector.load %arg0[%c0, %c0_0] : memref<128x128xf32, #tpu.memory_space<vmem>>, vector<128x128xf32>
    %c0_1 = arith.constant 0 : index
    %c0_2 = arith.constant 0 : index
    %1 = vector.load %arg1[%c0_1, %c0_2] : memref<128x128xf32, #tpu.memory_space<vmem>>, vector<128x128xf32>
    %c0_3 = arith.constant 0 : index
    %c0_4 = arith.constant 0 : index
    %2 = vector.load %arg2[%c0_3, %c0_4] : memref<128x128xf32, #tpu.memory_space<vmem>>, vector<128x128xf32>
    %c0_5 = arith.constant 0 : index
    %c0_6 = arith.constant 0 : index
    %3 = vector.load %arg3[%c0_5, %c0_6] : memref<128x128xf32, #tpu.memory_space<vmem>>, vector<128x128xf32>
    %c0_7 = arith.constant 0 : index
    %c0_8 = arith.constant 0 : index
    %4 = vector.load %arg5[%c0_7, %c0_8] : memref<128x128xf32, #tpu.memory_space<vmem>>, vector<128x128xf32>
    %c0_9 = arith.constant 0 : index
    %c0_10 = arith.constant 0 : index
    %5 = vector.load %arg6[%c0_9, %c0_10] : memref<1x128xf32, #tpu.memory_space<vmem>>, vector<1x128xf32>
    %c0_11 = arith.constant 0 : index
    %c0_12 = arith.constant 0 : index
    %6 = vector.load %arg7[%c0_11, %c0_12] : memref<128x128xf32, #tpu.memory_space<vmem>>, vector<128x128xf32>
    %c0_13 = arith.constant 0 : index
    %c0_14 = arith.constant 0 : index
    %7 = vector.load %arg8[%c0_13, %c0_14] : memref<1x128xf32, #tpu.memory_space<vmem>>, vector<1x128xf32>
    %cst = arith.constant dense<0.000000e+00> : vector<128x128xf32>
    %8 = tpu.matmul %2, %0, %cst {dimension_numbers = #tpu.dot_dimension_numbers<[1], [0], [0], [1], [0, 0, 1, 1], [], []>} : vector<128x128xf32>, vector<128x128xf32>, vector<128x128xf32> -> vector<128x128xf32>
    %9 = arith.addf %8, %1 : vector<128x128xf32>
    %cst_15 = arith.constant 0.000000e+00 : f32
    %10 = vector.broadcast %cst_15 : f32 to vector<128x128xf32>
    %11 = arith.maximumf %9, %10 : vector<128x128xf32>
    %cst_16 = arith.constant dense<0.000000e+00> : vector<128x128xf32>
    %12 = tpu.matmul %3, %11, %cst_16 {dimension_numbers = #tpu.dot_dimension_numbers<[1], [0], [0], [1], [0, 0, 1, 1], [], []>} : vector<128x128xf32>, vector<128x128xf32>, vector<128x128xf32> -> vector<128x128xf32>
    %13 = arith.addf %0, %12 : vector<128x128xf32>
    %cst_17 = arith.constant dense<0.000000e+00> : vector<128x128xf32>
    %14 = tpu.matmul %13, %4, %cst_17 {dimension_numbers = #tpu.dot_dimension_numbers<[1], [0], [0], [1], [0, 0, 1, 1], [], []>} : vector<128x128xf32>, vector<128x128xf32>, vector<128x128xf32> -> vector<128x128xf32>
    %15 = vector.broadcast %5 : vector<1x128xf32> to vector<128x128xf32>
    %16 = arith.addf %14, %15 : vector<128x128xf32>
    %cst_18 = arith.constant 0.000000e+00 : f32
    %17 = vector.broadcast %cst_18 : f32 to vector<128x128xf32>
    %18 = arith.maximumf %16, %17 : vector<128x128xf32>
    %cst_19 = arith.constant dense<0.000000e+00> : vector<128x128xf32>
    %19 = tpu.matmul %18, %6, %cst_19 {dimension_numbers = #tpu.dot_dimension_numbers<[1], [0], [0], [1], [0, 0, 1, 1], [], []>} : vector<128x128xf32>, vector<128x128xf32>, vector<128x128xf32> -> vector<128x128xf32>
    %20 = vector.broadcast %7 : vector<1x128xf32> to vector<128x128xf32>
    %21 = arith.addf %19, %20 : vector<128x128xf32>
    %cst_20 = arith.constant 0.000000e+00 : f32
    %22 = vector.broadcast %cst_20 : f32 to vector<128x128xf32>
    %23 = arith.maximumf %21, %22 : vector<128x128xf32>
    %c0_21 = arith.constant 0 : index
    %c0_22 = arith.constant 0 : index
    %24 = vector.load %arg9[%c0_21, %c0_22] : memref<128x128xf32, #tpu.memory_space<vmem>>, vector<128x128xf32>
    %c0_23 = arith.constant 0 : index
    %c0_24 = arith.constant 0 : index
    %25 = vector.load %arg10[%c0_23, %c0_24] : memref<1x128xf32, #tpu.memory_space<vmem>>, vector<1x128xf32>
    %c0_25 = arith.constant 0 : index
    %c0_26 = arith.constant 0 : index
    %26 = vector.load %arg11[%c0_25, %c0_26] : memref<128x128xf32, #tpu.memory_space<vmem>>, vector<128x128xf32>
    %c0_27 = arith.constant 0 : index
    %c0_28 = arith.constant 0 : index
    %27 = vector.load %arg12[%c0_27, %c0_28] : memref<1x128xf32, #tpu.memory_space<vmem>>, vector<1x128xf32>
    %cst_29 = arith.constant dense<0.000000e+00> : vector<128x128xf32>
    %28 = tpu.matmul %2, %23, %cst_29 {dimension_numbers = #tpu.dot_dimension_numbers<[1], [0], [0], [1], [0, 0, 1, 1], [], []>} : vector<128x128xf32>, vector<128x128xf32>, vector<128x128xf32> -> vector<128x128xf32>
    %29 = arith.addf %28, %1 : vector<128x128xf32>
    %cst_30 = arith.constant 0.000000e+00 : f32
    %30 = vector.broadcast %cst_30 : f32 to vector<128x128xf32>
    %31 = arith.maximumf %29, %30 : vector<128x128xf32>
    %cst_31 = arith.constant dense<0.000000e+00> : vector<128x128xf32>
    %32 = tpu.matmul %3, %31, %cst_31 {dimension_numbers = #tpu.dot_dimension_numbers<[1], [0], [0], [1], [0, 0, 1, 1], [], []>} : vector<128x128xf32>, vector<128x128xf32>, vector<128x128xf32> -> vector<128x128xf32>
    %33 = arith.addf %23, %32 : vector<128x128xf32>
    %cst_32 = arith.constant dense<0.000000e+00> : vector<128x128xf32>
    %34 = tpu.matmul %33, %24, %cst_32 {dimension_numbers = #tpu.dot_dimension_numbers<[1], [0], [0], [1], [0, 0, 1, 1], [], []>} : vector<128x128xf32>, vector<128x128xf32>, vector<128x128xf32> -> vector<128x128xf32>
    %35 = vector.broadcast %25 : vector<1x128xf32> to vector<128x128xf32>
    %36 = arith.addf %34, %35 : vector<128x128xf32>
    %cst_33 = arith.constant 0.000000e+00 : f32
    %37 = vector.broadcast %cst_33 : f32 to vector<128x128xf32>
    %38 = arith.maximumf %36, %37 : vector<128x128xf32>
    %cst_34 = arith.constant dense<0.000000e+00> : vector<128x128xf32>
    %39 = tpu.matmul %38, %26, %cst_34 {dimension_numbers = #tpu.dot_dimension_numbers<[1], [0], [0], [1], [0, 0, 1, 1], [], []>} : vector<128x128xf32>, vector<128x128xf32>, vector<128x128xf32> -> vector<128x128xf32>
    %40 = vector.broadcast %27 : vector<1x128xf32> to vector<128x128xf32>
    %41 = arith.addf %39, %40 : vector<128x128xf32>
    %c0_35 = arith.constant 0 : index
    %c0_36 = arith.constant 0 : index
    %42 = vector.load %arg17[%c0_35, %c0_36] : memref<128x128xf32, #tpu.memory_space<vmem>>, vector<128x128xf32>
    tpu.vector_store %arg17[%c0_35, %c0_36], %41 {strides = array<i32>} : memref<128x128xf32, #tpu.memory_space<vmem>>, vector<128x128xf32>,
    %c0_37 = arith.constant 0 : index
    %c0_38 = arith.constant 0 : index
    %43 = vector.load %arg4[%c0_37, %c0_38] : memref<8x128xf32, #tpu.memory_space<vmem>>, vector<8x128xf32>
    %cst_39 = arith.constant dense<0.000000e+00> : vector<8x128xf32>
    %44 = tpu.matmul %43, %41, %cst_39 {dimension_numbers = #tpu.dot_dimension_numbers<[1], [0], [0], [1], [0, 0, 1, 1], [], []>} : vector<8x128xf32>, vector<128x128xf32>, vector<8x128xf32> -> vector<8x128xf32>
    %c0_40 = arith.constant 0 : index
    %c0_41 = arith.constant 0 : index
    %45 = vector.load %arg13[%c0_40, %c0_41] : memref<128x128xf32, #tpu.memory_space<vmem>>, vector<128x128xf32>
    %c0_42 = arith.constant 0 : index
    %c0_43 = arith.constant 0 : index
    %46 = vector.load %arg14[%c0_42, %c0_43] : memref<1x128xf32, #tpu.memory_space<vmem>>, vector<1x128xf32>
    %c0_44 = arith.constant 0 : index
    %c0_45 = arith.constant 0 : index
    %47 = vector.load %arg15[%c0_44, %c0_45] : memref<128x128xf32, #tpu.memory_space<vmem>>, vector<128x128xf32>
    %c0_46 = arith.constant 0 : index
    %c0_47 = arith.constant 0 : index
    %48 = vector.load %arg16[%c0_46, %c0_47] : memref<1x128xf32, #tpu.memory_space<vmem>>, vector<1x128xf32>
    %cst_48 = arith.constant dense<0.000000e+00> : vector<8x128xf32>
    %49 = tpu.matmul %44, %45, %cst_48 {dimension_numbers = #tpu.dot_dimension_numbers<[1], [0], [0], [1], [0, 0, 1, 1], [], []>} : vector<8x128xf32>, vector<128x128xf32>, vector<8x128xf32> -> vector<8x128xf32>
    %50 = vector.broadcast %46 : vector<1x128xf32> to vector<8x128xf32>
    %51 = arith.addf %49, %50 : vector<8x128xf32>
    %cst_49 = arith.constant 0.000000e+00 : f32
    %52 = vector.broadcast %cst_49 : f32 to vector<8x128xf32>
    %53 = arith.maximumf %51, %52 : vector<8x128xf32>
    %cst_50 = arith.constant dense<0.000000e+00> : vector<8x128xf32>
    %54 = tpu.matmul %53, %47, %cst_50 {dimension_numbers = #tpu.dot_dimension_numbers<[1], [0], [0], [1], [0, 0, 1, 1], [], []>} : vector<8x128xf32>, vector<128x128xf32>, vector<8x128xf32> -> vector<8x128xf32>
    %55 = vector.broadcast %48 : vector<1x128xf32> to vector<8x128xf32>
    %56 = arith.addf %54, %55 : vector<8x128xf32>
    %c0_51 = arith.constant 0 : index
    %c0_52 = arith.constant 0 : index
    %57 = vector.load %arg18[%c0_51, %c0_52] : memref<8x128xf32, #tpu.memory_space<vmem>>, vector<8x128xf32>
    tpu.vector_store %arg18[%c0_51, %c0_52], %56 {strides = array<i32>} : memref<8x128xf32, #tpu.memory_space<vmem>>, vector<8x128xf32>,
    return
  }
}

</mosaic_0001>

<bundles_post_ra>
// kernel: featured_transfer_forward.4
= control target key start
LH: loop header
LB: loop body
LE: loop exit
PB: predicated region body
PF: predicated region fallthrough
CT: control target
= control target key end

     0   :  { %s1103_s1 = inlined_call_operand.vmem [shape: bf16[128,128], index: 1, kind: input, shape index: {}]   ;;  %s1104_s0 = inlined_call_operand.vmem [shape: f32[128,128], index: 0, kind: input, shape index: {}]   ;;  %s1105_s3 = inlined_call_operand.vmem [shape: bf16[128,128], index: 3, kind: input, shape index: {}]   ;;  %s1106_s5 = inlined_call_operand.vmem [shape: bf16[128,128], index: 5, kind: input, shape index: {}]   ;;  %s1107_s2 = inlined_call_operand.vmem [shape: f32[1,128], index: 2, kind: input, shape index: {}]   ;;  %s1108_s4 = inlined_call_operand.vmem [shape: f32[1,128], index: 4, kind: input, shape index: {}]   ;;  %s1109_s6 = inlined_call_operand.vmem [shape: f32[1,128], index: 6, kind: input, shape index: {}]   ;;  %s1110_s7 = inlined_call_operand.vmem [shape: f32[128,128], index: 7, kind: output, shape index: {}]  }
   0x1   :  { %v826_v0 = vld [vmem:[%s1103_s1] sm:$0xff]   ;;  %v827_v1 = vld [vmem:[%s1103_s1 + $0x8] sm:$0xff]   ;;  %v828_v2 = vld [vmem:[%s1103_s1 + $0x10] sm:$0xff]  }
   0x2   :  { %714 = vmatprep.subr.bf16.mxu0 %v826_v0  ;;  %v829_v3 = vld [vmem:[%s1103_s1 + $0x18] sm:$0xff]   ;;  %v27_v4 = vld [vmem:[%s1104_s0] sm:$0xff]  ;;  %v28_v5 = vld [vmem:[%s1104_s0 + $0x8] sm:$0xff] }
   0x3   :  { %715 = vmatpush3.bf16.msra.mxu0 %v826_v0  ;;  %v60_v6 = vpack.c.bf16 %v28_v5, %v27_v4  ;;  %v830_v7 = vld [vmem:[%s1103_s1 + $0x20] sm:$0xff]   ;;  %v835_v9 = vld [vmem:[%s1105_s3 + $0x8] sm:$0xff]   ;;  %v836_v11 = vld [vmem:[%s1105_s3 + $0x10] sm:$0xff]  }
   0x4   :  { %716 = vmatprep.subr.bf16.mxu0 %v827_v1  ;;  %v834_v8 = vld [vmem:[%s1105_s3] sm:$0xff]   ;;  %v831_v10 = vld [vmem:[%s1103_s1 + $0x28] sm:$0xff]   ;;  %v832_v12 = vld [vmem:[%s1103_s1 + $0x30] sm:$0xff]  }
   0x5   :  { %730 = vmatprep.mubr.bf16.mxu0 %v60_v6  ;;  %746 = vmatprep.subr.bf16.mxu1 %v834_v8  ;;  %v837_v13 = vld [vmem:[%s1105_s3 + $0x18] sm:$0xff]   ;;  %v838_v15 = vld [vmem:[%s1105_s3 + $0x20] sm:$0xff]   ;;  %v29_v16 = vld [vmem:[%s1104_s0 + $0x10] sm:$0xff] }
   0x6   :  { %747 = vmatpush3.bf16.msra.mxu1 %v834_v8  ;;  %v833_v14 = vld [vmem:[%s1103_s1 + $0x38] sm:$0xff]   ;;  %v31_v18 = vld [vmem:[%s1104_s0 + $0x20] sm:$0xff]  ;;  %v32_v19 = vld [vmem:[%s1104_s0 + $0x28] sm:$0xff] }
   0x7   :  { %717 = vmatpush3.bf16.msra.mxu0 %v827_v1  ;;  %748 = vmatprep.subr.bf16.mxu1 %v835_v9  ;;  %v30_v17 = vld [vmem:[%s1104_s0 + $0x18] sm:$0xff]  ;;  %v839_v21 = vld [vmem:[%s1105_s3 + $0x28] sm:$0xff]   ;;  %v62_v22 = vpack.c.bf16 %v32_v19, %v31_v18  ;;  %v33_v23 = vld [vmem:[%s1104_s0 + $0x30] sm:$0xff] }
   0x8   :  { %718 = vmatprep.subr.bf16.mxu0 %v828_v2  ;;  %v61_v20 = vpack.c.bf16 %v30_v17, %v29_v16  ;;  %v34_v24 = vld [vmem:[%s1104_s0 + $0x38] sm:$0xff]  ;;  %v35_v25 = vld [vmem:[%s1104_s0 + $0x40] sm:$0xff]  ;;  %v36_v26 = vld [vmem:[%s1104_s0 + $0x48] sm:$0xff] }
   0x9   :  { %v63_v27 = vpack.c.bf16 %v34_v24, %v33_v23  ;;  %v64_v28 = vpack.c.bf16 %v36_v26, %v35_v25  ;;  %v37_v29 = vld [vmem:[%s1104_s0 + $0x50] sm:$0xff]  ;;  %v38_v30 = vld [vmem:[%s1104_s0 + $0x58] sm:$0xff]  ;;  %v39_v31 = vld [vmem:[%s1104_s0 + $0x60] sm:$0xff] }
   0xa   :  { %749 = vmatpush3.bf16.msra.mxu1 %v835_v9  ;;  %v40_v32 = vld [vmem:[%s1104_s0 + $0x68] sm:$0xff]  ;;  %v65_v33 = vpack.c.bf16 %v38_v30, %v37_v29  ;;  %v41_v35 = vld [vmem:[%s1104_s0 + $0x70] sm:$0xff]  ;;  %v42_v36 = vld [vmem:[%s1104_s0 + $0x78] sm:$0xff] }
   0xb   :  { %719 = vmatpush3.bf16.msra.mxu0 %v828_v2  ;;  %750 = vmatprep.subr.bf16.mxu1 %v836_v11  ;;  %v66_v34 = vpack.c.bf16 %v40_v32, %v39_v31  ;;  %v67_v37 = vpack.c.bf16 %v42_v36, %v41_v35  ;;  %v840_v38 = vld [vmem:[%s1105_s3 + $0x30] sm:$0xff]   ;;  %v841_v39 = vld [vmem:[%s1105_s3 + $0x38] sm:$0xff]   ;;  %v842_v40 = vld [vmem:[%s1106_s5] sm:$0xff]  }
   0xc   :  { %720 = vmatprep.subr.bf16.mxu0 %v829_v3  ;;  %v843_v41 = vld [vmem:[%s1106_s5 + $0x8] sm:$0xff]   ;;  %v844_v42 = vld [vmem:[%s1106_s5 + $0x10] sm:$0xff]   ;;  %v998_v43 = vld [vmem:[%s1106_s5 + $0x18] sm:$0xff]  }
   0xd   :  { %v1004_v44 = vld [vmem:[%s1106_s5 + $0x20] sm:$0xff]   ;;  %v1011_v45 = vld [vmem:[%s1106_s5 + $0x28] sm:$0xff]  }
   0xe   :  { %751 = vmatpush3.bf16.msra.mxu1 %v836_v11  ;;  %v1019_v46 = vld [vmem:[%s1107_s2] ss:$0 sm:$0xff] }
   0xf   :  { %721 = vmatpush3.bf16.msra.mxu0 %v829_v3  ;;  %752 = vmatprep.subr.bf16.mxu1 %v837_v13 }
  0x10   :  { %722 = vmatprep.subr.bf16.mxu0 %v830_v7 }
  0x12   :  { %753 = vmatpush3.bf16.msra.mxu1 %v837_v13 }
  0x13   :  { %723 = vmatpush3.bf16.msra.mxu0 %v830_v7  ;;  %754 = vmatprep.subr.bf16.mxu1 %v838_v15 }
  0x14   :  { %724 = vmatprep.subr.bf16.mxu0 %v831_v10 }
  0x16   :  { %755 = vmatpush3.bf16.msra.mxu1 %v838_v15 }
  0x17   :  { %725 = vmatpush3.bf16.msra.mxu0 %v831_v10  ;;  %756 = vmatprep.subr.bf16.mxu1 %v839_v21 }
  0x18   :  { %726 = vmatprep.subr.bf16.mxu0 %v832_v12 }
  0x1a   :  { %757 = vmatpush3.bf16.msra.mxu1 %v839_v21 }
  0x1b   :  { %727 = vmatpush3.bf16.msra.mxu0 %v832_v12  ;;  %758 = vmatprep.subr.bf16.mxu1 %v840_v38 }
  0x1c   :  { %728 = vmatprep.subr.bf16.mxu0 %v833_v14 }
  0x1e   :  { %759 = vmatpush3.bf16.msra.mxu1 %v840_v38 }
  0x1f   :  { %729 = vmatpush3.bf16.msra.mxu0 %v833_v14  ;;  %760 = vmatprep.subr.bf16.mxu1 %v841_v39 }
  0x20   :  { %778 = vmatprep.subr.bf16.mxu0 %v842_v40 }
  0x22   :  { %731 = vmatmul.mubr.bf16.vlgmr.msra.gmra.mrb[0].mxu0 %v61_v20  ;;  %761 = vmatpush3.bf16.msra.mxu1 %v841_v39  ;;  %v848_v39 = vld [vmem:[%s1106_s5 + $0x30] sm:$0xff]  }
  0x23   :  { %734 = vmatprep.mubr.bf16.mxu0 %v62_v22  ;;  %810 = vmatprep.subr.bf16.mxu1 %v842_v40 }
  0x24   :  { %779 = vmatpush3.bf16.msra.mxu0 %v842_v40 }
  0x25   :  { %780 = vmatprep.subr.bf16.mxu0 %v843_v41 }
  0x28   :  { %781 = vmatpush3.bf16.msra.mxu0 %v843_v41 }
  0x29   :  { %782 = vmatprep.subr.bf16.mxu0 %v844_v42 }
  0x2a   :  { %735 = vmatmul.mubr.bf16.gmra.mrb[4].mxu0 %v63_v27 }
  0x2b   :  { %738 = vmatprep.mubr.bf16.mxu0 %v64_v28 }
  0x2c   :  { %783 = vmatpush3.bf16.msra.mxu0 %v844_v42 }
  0x2d   :  { %784 = vmatprep.subr.bf16.mxu0 %v998_v43 }
  0x30   :  { %785 = vmatpush3.bf16.msra.mxu0 %v998_v43 }
  0x31   :  { %786 = vmatprep.subr.bf16.mxu0 %v1004_v44 }
  0x32   :  { %739 = vmatmul.mubr.bf16.gmra.mrb[8].mxu0 %v65_v33 }
  0x33   :  { %742 = vmatprep.mubr.bf16.mxu0 %v66_v34 }
  0x34   :  { %787 = vmatpush3.bf16.msra.mxu0 %v1004_v44 }
  0x35   :  { %788 = vmatprep.subr.bf16.mxu0 %v1011_v45 }
  0x38   :  { %789 = vmatpush3.bf16.msra.mxu0 %v1011_v45 }
  0x39   :  { %790 = vmatprep.subr.bf16.mxu0 %v848_v39 }
  0x3a   :  { %743 = vmatmul.mubr.bf16.gmra.mrb[12].mxu0 %v67_v37 }
  0x3c   :  { %791 = vmatpush3.bf16.msra.mxu0 %v848_v39 }
  0xf5   :  { %v732_v47 = vpop.f32.mrb[0].mxu0 }
  0xf6   :  { %v165_v48 = vadd.f32 %v732_v47, %v1019_v46  ;;  %v156_v49 = vpop.f32.mrb[1].mxu0 }
  0xf7   :  { %v157_v50 = vadd.f32 %v1019_v46, %v156_v49  ;;  %v733_v51 = vpop.f32.mrb[2].mxu0 }
  0xf8   :  { %v168_v52 = vadd.f32 %v733_v51, %v1019_v46  ;;  %v159_v53 = vpop.f32.mrb[3].mxu0  ;;  %v221_v55 = vmax.f32 %v165_v48, 0.0 }
  0xf9   :  { %v160_v54 = vadd.f32 %v1019_v46, %v159_v53  ;;  %v219_v57 = vmax.f32 %v157_v50, 0.0 }
  0xfa   :  { %v222_v56 = vmax.f32 %v168_v52, 0.0 }
  0xfb   :  { %v220_v58 = vmax.f32 %v160_v54, 0.0 }
  0xfc   :  { %v253_v59 = vpack.c.bf16 %v222_v56, %v221_v55 }
  0xfd   :  { %v736_v60 = vpop.f32.mrb[4].mxu0  ;;  %v252_v61 = vpack.c.bf16 %v220_v58, %v219_v57 }
  0xfe   :  { %v181_v62 = vadd.f32 %v736_v60, %v1019_v46  ;;  %v172_v63 = vpop.f32.mrb[5].mxu0 }
  0xff   :  { %v173_v0 = vadd.f32 %v1019_v46, %v172_v63  ;;  %v737_v1 = vpop.f32.mrb[6].mxu0  ;;  %762 = vmatprep.mubr.bf16.mxu1 %v252_v61 }
 0x100   :  { %v184_v2 = vadd.f32 %v737_v1, %v1019_v46  ;;  %v175_v3 = vpop.f32.mrb[7].mxu0  ;;  %763 = vmatmul.mubr.bf16.vlgmr.msra.gmra.mrb[0].mxu1 %v253_v59  ;;  %v225_v5 = vmax.f32 %v181_v62, 0.0 }
 0x101   :  { %v176_v4 = vadd.f32 %v1019_v46, %v175_v3  ;;  %818 = vmatpush3.bf16.msra.mxu1 %v842_v40  ;;  %v223_v7 = vmax.f32 %v173_v0, 0.0  ;;  %v849_v40 = vld [vmem:[%s1106_s5 + $0x38] sm:$0xff]  }
 0x102   :  { %v226_v6 = vmax.f32 %v184_v2, 0.0  ;;  %811 = vmatprep.subr.bf16.mxu1 %v843_v41  ;;  %792 = vmatprep.subr.bf16.mxu0 %v849_v40 }
 0x103   :  { %v224_v8 = vmax.f32 %v176_v4, 0.0  ;;  %793 = vmatpush3.bf16.msra.mxu0 %v849_v40 }
 0x104   :  { %v255_v9 = vpack.c.bf16 %v226_v6, %v225_v5 }
 0x105   :  { %v254_v10 = vpack.c.bf16 %v224_v8, %v223_v7  ;;  %v740_v11 = vpop.f32.mrb[8].mxu0  ;;  %819 = vmatpush3.bf16.msra.mxu1 %v843_v41  ;;  %v648_v41 = vld [vmem:[%s1108_s4] ss:$0 sm:$0xff] }
 0x106   :  { %v197_v12 = vadd.f32 %v740_v11, %v1019_v46  ;;  %v188_v13 = vpop.f32.mrb[9].mxu0  ;;  %812 = vmatprep.subr.bf16.mxu1 %v844_v42 }
 0x107   :  { %v189_v14 = vadd.f32 %v1019_v46, %v188_v13  ;;  %v741_v15 = vpop.f32.mrb[10].mxu0  ;;  %766 = vmatprep.mubr.bf16.mxu1 %v254_v10 }
 0x108   :  { %v200_v16 = vadd.f32 %v741_v15, %v1019_v46  ;;  %v191_v17 = vpop.f32.mrb[11].mxu0  ;;  %767 = vmatmul.mubr.bf16.gmra.mrb[4].mxu1 %v255_v9  ;;  %v229_v19 = vmax.f32 %v197_v12, 0.0 }
 0x109   :  { %v192_v18 = vadd.f32 %v1019_v46, %v191_v17  ;;  %820 = vmatpush3.bf16.msra.mxu1 %v844_v42  ;;  %v227_v21 = vmax.f32 %v189_v14, 0.0 }
 0x10a   :  { %v230_v20 = vmax.f32 %v200_v16, 0.0  ;;  %813 = vmatprep.subr.bf16.mxu1 %v998_v43 }
 0x10b   :  { %v228_v22 = vmax.f32 %v192_v18, 0.0 }
 0x10c   :  { %v257_v23 = vpack.c.bf16 %v230_v20, %v229_v19 }
 0x10d   :  { %v256_v24 = vpack.c.bf16 %v228_v22, %v227_v21  ;;  %v744_v25 = vpop.f32.mrb[12].mxu0  ;;  %821 = vmatpush3.bf16.msra.mxu1 %v998_v43 }
 0x10e   :  { %v213_v26 = vadd.f32 %v744_v25, %v1019_v46  ;;  %v204_v27 = vpop.f32.mrb[13].mxu0  ;;  %814 = vmatprep.subr.bf16.mxu1 %v1004_v44 }
 0x10f   :  { %v205_v28 = vadd.f32 %v1019_v46, %v204_v27  ;;  %v745_v29 = vpop.f32.mrb[14].mxu0  ;;  %770 = vmatprep.mubr.bf16.mxu1 %v256_v24 }
 0x110   :  { %v216_v30 = vadd.f32 %v745_v29, %v1019_v46  ;;  %v207_v31 = vpop.f32.mrb[15].mxu0  ;;  %771 = vmatmul.mubr.bf16.gmra.mrb[8].mxu1 %v257_v23  ;;  %v233_v33 = vmax.f32 %v213_v26, 0.0 }
 0x111   :  { %v208_v32 = vadd.f32 %v1019_v46, %v207_v31  ;;  %822 = vmatpush3.bf16.msra.mxu1 %v1004_v44  ;;  %v231_v35 = vmax.f32 %v205_v28, 0.0 }
 0x112   :  { %v234_v34 = vmax.f32 %v216_v30, 0.0  ;;  %815 = vmatprep.subr.bf16.mxu1 %v1011_v45 }
 0x113   :  { %v232_v36 = vmax.f32 %v208_v32, 0.0 }
 0x114   :  { %v259_v37 = vpack.c.bf16 %v234_v34, %v233_v33  ;;  %v657_v34 = vld [vmem:[%s1109_s6] ss:$0 sm:$0xff] }
 0x115   :  { %v258_v38 = vpack.c.bf16 %v232_v36, %v231_v35  ;;  %823 = vmatpush3.bf16.msra.mxu1 %v1011_v45 }
 0x116   :  { %816 = vmatprep.subr.bf16.mxu1 %v848_v39 }
 0x117   :  { %774 = vmatprep.mubr.bf16.mxu1 %v258_v38 }
 0x118   :  { %775 = vmatmul.mubr.bf16.gmra.mrb[12].mxu1 %v259_v37 }
 0x119   :  { %824 = vmatpush3.bf16.msra.mxu1 %v848_v39 }
 0x11a   :  { %817 = vmatprep.subr.bf16.mxu1 %v849_v40 }
 0x11d   :  { %825 = vmatpush3.bf16.msra.mxu1 %v849_v40 }
 0x1d3   :  { %v764_v42 = vpop.f32.mrb[0].mxu1 }
 0x1d4   :  { %v357_v43 = vadd.f32 %v764_v42, %v648_v41  ;;  %v348_v44 = vpop.f32.mrb[1].mxu1 }
 0x1d5   :  { %v349_v45 = vadd.f32 %v648_v41, %v348_v44  ;;  %v765_v46 = vpop.f32.mrb[2].mxu1 }
 0x1d6   :  { %v360_v47 = vadd.f32 %v765_v46, %v648_v41  ;;  %v351_v48 = vpop.f32.mrb[3].mxu1  ;;  %v413_v50 = vmax.f32 %v357_v43, 0.0 }
 0x1d7   :  { %v352_v49 = vadd.f32 %v648_v41, %v351_v48  ;;  %v411_v52 = vmax.f32 %v349_v45, 0.0 }
 0x1d8   :  { %v414_v51 = vmax.f32 %v360_v47, 0.0 }
 0x1d9   :  { %v412_v53 = vmax.f32 %v352_v49, 0.0 }
 0x1da   :  { %v445_v54 = vpack.c.bf16 %v414_v51, %v413_v50 }
 0x1db   :  { %v444_v55 = vpack.c.bf16 %v412_v53, %v411_v52  ;;  %v768_v56 = vpop.f32.mrb[4].mxu1 }
 0x1dc   :  { %v373_v57 = vadd.f32 %v768_v56, %v648_v41  ;;  %v364_v58 = vpop.f32.mrb[5].mxu1 }
 0x1dd   :  { %v365_v59 = vadd.f32 %v648_v41, %v364_v58  ;;  %v769_v60 = vpop.f32.mrb[6].mxu1  ;;  %794 = vmatprep.mubr.bf16.mxu0 %v444_v55 }
 0x1de   :  { %v376_v61 = vadd.f32 %v769_v60, %v648_v41  ;;  %v367_v62 = vpop.f32.mrb[7].mxu1  ;;  %795 = vmatmul.mubr.bf16.vlgmr.msra.gmra.mrb[16].mxu0 %v445_v54  ;;  %v417_v0 = vmax.f32 %v373_v57, 0.0 }
 0x1df   :  { %v368_v63 = vadd.f32 %v648_v41, %v367_v62  ;;  %v415_v2 = vmax.f32 %v365_v59, 0.0 }
 0x1e0   :  { %v418_v1 = vmax.f32 %v376_v61, 0.0 }
 0x1e1   :  { %v416_v3 = vmax.f32 %v368_v63, 0.0 }
 0x1e2   :  { %v447_v4 = vpack.c.bf16 %v418_v1, %v417_v0 }
 0x1e3   :  { %v446_v5 = vpack.c.bf16 %v416_v3, %v415_v2  ;;  %v772_v6 = vpop.f32.mrb[8].mxu1 }
 0x1e4   :  { %v389_v7 = vadd.f32 %v772_v6, %v648_v41  ;;  %v380_v8 = vpop.f32.mrb[9].mxu1 }
 0x1e5   :  { %v381_v9 = vadd.f32 %v648_v41, %v380_v8  ;;  %v773_v10 = vpop.f32.mrb[10].mxu1  ;;  %798 = vmatprep.mubr.bf16.mxu0 %v446_v5 }
 0x1e6   :  { %v392_v11 = vadd.f32 %v773_v10, %v648_v41  ;;  %v383_v12 = vpop.f32.mrb[11].mxu1  ;;  %799 = vmatmul.mubr.bf16.gmra.mrb[20].mxu0 %v447_v4  ;;  %v421_v14 = vmax.f32 %v389_v7, 0.0 }
 0x1e7   :  { %v384_v13 = vadd.f32 %v648_v41, %v383_v12  ;;  %v419_v16 = vmax.f32 %v381_v9, 0.0 }
 0x1e8   :  { %v422_v15 = vmax.f32 %v392_v11, 0.0 }
 0x1e9   :  { %v420_v17 = vmax.f32 %v384_v13, 0.0 }
 0x1ea   :  { %v449_v18 = vpack.c.bf16 %v422_v15, %v421_v14 }
 0x1eb   :  { %v448_v19 = vpack.c.bf16 %v420_v17, %v419_v16  ;;  %v776_v20 = vpop.f32.mrb[12].mxu1 }
 0x1ec   :  { %v405_v21 = vadd.f32 %v776_v20, %v648_v41  ;;  %v396_v22 = vpop.f32.mrb[13].mxu1 }
 0x1ed   :  { %v397_v23 = vadd.f32 %v648_v41, %v396_v22  ;;  %v777_v24 = vpop.f32.mrb[14].mxu1  ;;  %802 = vmatprep.mubr.bf16.mxu1 %v448_v19 }
 0x1ee   :  { %v408_v25 = vadd.f32 %v777_v24, %v648_v41  ;;  %v399_v26 = vpop.f32.mrb[15].mxu1  ;;  %803 = vmatmul.mubr.bf16.vlgmr.msra.gmra.mrb[16].mxu1 %v449_v18  ;;  %v425_v28 = vmax.f32 %v405_v21, 0.0 }
 0x1ef   :  { %v400_v27 = vadd.f32 %v648_v41, %v399_v26  ;;  %v423_v30 = vmax.f32 %v397_v23, 0.0 }
 0x1f0   :  { %v426_v29 = vmax.f32 %v408_v25, 0.0 }
 0x1f1   :  { %v424_v31 = vmax.f32 %v400_v27, 0.0 }
 0x1f2   :  { %v451_v32 = vpack.c.bf16 %v426_v29, %v425_v28 }
 0x1f3   :  { %v450_v33 = vpack.c.bf16 %v424_v31, %v423_v30 }
 0x1f5   :  { %806 = vmatprep.mubr.bf16.mxu1 %v450_v33 }
 0x1f6   :  { %807 = vmatmul.mubr.bf16.gmra.mrb[20].mxu1 %v451_v32 }
 0x2b1   :  { %v796_v35 = vpop.f32.mrb[16].mxu0 }
 0x2b2   :  { %v549_v36 = vadd.f32 %v796_v35, %v657_v34  ;;  %v540_v37 = vpop.f32.mrb[17].mxu0 }
 0x2b3   :  { %v541_v38 = vadd.f32 %v657_v34, %v540_v37  ;;  %v797_v39 = vpop.f32.mrb[18].mxu0 }
 0x2b4   :  { %v605_v40 = vmax.f32 %v549_v36, 0.0  ;;  %v552_v42 = vadd.f32 %v797_v39, %v657_v34  ;;  %v543_v41 = vpop.f32.mrb[19].mxu0 }
 0x2b5   :  { %v603_v43 = vmax.f32 %v541_v38, 0.0  ;;  %v544_v44 = vadd.f32 %v657_v34, %v543_v41 }
 0x2b6   :  { %621 = vst [vmem:[%s1110_s7 + $0x10] sm:$0xff] %v605_v40  ;;  %v606_v45 = vmax.f32 %v552_v42, 0.0 }
 0x2b7   :  { %619 = vst [vmem:[%s1110_s7] sm:$0xff] %v603_v43  ;;  %v604_v46 = vmax.f32 %v544_v44, 0.0 }
 0x2b8   :  { %622 = vst [vmem:[%s1110_s7 + $0x18] sm:$0xff] %v606_v45 }
 0x2b9   :  { %620 = vst [vmem:[%s1110_s7 + $0x8] sm:$0xff] %v604_v46  ;;  %v800_v47 = vpop.f32.mrb[20].mxu0 }
 0x2ba   :  { %v565_v48 = vadd.f32 %v800_v47, %v657_v34  ;;  %v556_v49 = vpop.f32.mrb[21].mxu0 }
 0x2bb   :  { %v557_v50 = vadd.f32 %v657_v34, %v556_v49  ;;  %v801_v51 = vpop.f32.mrb[22].mxu0 }
 0x2bc   :  { %v609_v52 = vmax.f32 %v565_v48, 0.0  ;;  %v568_v53 = vadd.f32 %v801_v51, %v657_v34  ;;  %v559_v54 = vpop.f32.mrb[23].mxu0 }
 0x2bd   :  { %v607_v55 = vmax.f32 %v557_v50, 0.0  ;;  %v560_v56 = vadd.f32 %v657_v34, %v559_v54 }
 0x2be   :  { %625 = vst [vmem:[%s1110_s7 + $0x30] sm:$0xff] %v609_v52  ;;  %v610_v57 = vmax.f32 %v568_v53, 0.0 }
 0x2bf   :  { %623 = vst [vmem:[%s1110_s7 + $0x20] sm:$0xff] %v607_v55  ;;  %v608_v58 = vmax.f32 %v560_v56, 0.0 }
 0x2c0   :  { %626 = vst [vmem:[%s1110_s7 + $0x38] sm:$0xff] %v610_v57 }
 0x2c1   :  { %624 = vst [vmem:[%s1110_s7 + $0x28] sm:$0xff] %v608_v58  ;;  %v804_v59 = vpop.f32.mrb[16].mxu1 }
 0x2c2   :  { %v581_v60 = vadd.f32 %v804_v59, %v657_v34  ;;  %v572_v61 = vpop.f32.mrb[17].mxu1 }
 0x2c3   :  { %v573_v62 = vadd.f32 %v657_v34, %v572_v61  ;;  %v805_v63 = vpop.f32.mrb[18].mxu1 }
 0x2c4   :  { %v613_v0 = vmax.f32 %v581_v60, 0.0  ;;  %v584_v1 = vadd.f32 %v805_v63, %v657_v34  ;;  %v575_v2 = vpop.f32.mrb[19].mxu1 }
 0x2c5   :  { %v611_v3 = vmax.f32 %v573_v62, 0.0  ;;  %v576_v4 = vadd.f32 %v657_v34, %v575_v2 }
 0x2c6   :  { %629 = vst [vmem:[%s1110_s7 + $0x50] sm:$0xff] %v613_v0  ;;  %v614_v5 = vmax.f32 %v584_v1, 0.0 }
 0x2c7   :  { %627 = vst [vmem:[%s1110_s7 + $0x40] sm:$0xff] %v611_v3  ;;  %v612_v6 = vmax.f32 %v576_v4, 0.0 }
 0x2c8   :  { %630 = vst [vmem:[%s1110_s7 + $0x58] sm:$0xff] %v614_v5 }
 0x2c9   :  { %628 = vst [vmem:[%s1110_s7 + $0x48] sm:$0xff] %v612_v6  ;;  %v808_v7 = vpop.f32.mrb[20].mxu1 }
 0x2ca   :  { %v597_v8 = vadd.f32 %v808_v7, %v657_v34  ;;  %v588_v9 = vpop.f32.mrb[21].mxu1 }
 0x2cb   :  { %v589_v10 = vadd.f32 %v657_v34, %v588_v9  ;;  %v809_v11 = vpop.f32.mrb[22].mxu1 }
 0x2cc   :  { %v617_v12 = vmax.f32 %v597_v8, 0.0  ;;  %v600_v13 = vadd.f32 %v809_v11, %v657_v34  ;;  %v591_v14 = vpop.f32.mrb[23].mxu1 }
 0x2cd   :  { %v615_v15 = vmax.f32 %v589_v10, 0.0  ;;  %v592_v16 = vadd.f32 %v657_v34, %v591_v14 }
 0x2ce   :  { %633 = vst [vmem:[%s1110_s7 + $0x70] sm:$0xff] %v617_v12  ;;  %v618_v17 = vmax.f32 %v600_v13, 0.0 }
 0x2cf   :  { %631 = vst [vmem:[%s1110_s7 + $0x60] sm:$0xff] %v615_v15  ;;  %v616_v18 = vmax.f32 %v592_v16, 0.0 }
 0x2d0   :  { %634 = vst [vmem:[%s1110_s7 + $0x78] sm:$0xff] %v618_v17 }
 0x2d1   :  { %632 = vst [vmem:[%s1110_s7 + $0x68] sm:$0xff] %v616_v18 }

// kernel: featured_transfer_forward.5
= control target key start
LH: loop header
LB: loop body
LE: loop exit
PB: predicated region body
PF: predicated region fallthrough
CT: control target
= control target key end

     0   :  { %vm2967_vm0 = vmmov 0   ;;  %s4050_s0 = inlined_call_operand.vmem [shape: f32[128,128], index: 0, kind: input, shape index: {}]   ;;  %s4051_s2 = inlined_call_operand.vmem [shape: f32[128,128], index: 2, kind: input, shape index: {}]   ;;  %s4052_s3 = inlined_call_operand.vmem [shape: f32[128,128], index: 3, kind: input, shape index: {}]   ;;  %s4053_s5 = inlined_call_operand.vmem [shape: f32[128,128], index: 5, kind: input, shape index: {}]   ;;  %s4054_s1 = inlined_call_operand.vmem [shape: f32[128,128], index: 1, kind: input, shape index: {}]   ;;  %s4055_s7 = inlined_call_operand.vmem [shape: f32[128,128], index: 7, kind: input, shape index: {}]   ;;  %s4056_s6 = inlined_call_operand.vmem [shape: f32[1,128], index: 6, kind: input, shape index: {}]   ;;  %s4057_s8 = inlined_call_operand.vmem [shape: f32[1,128], index: 8, kind: input, shape index: {}]   ;;  %s4058_s9 = inlined_call_operand.vmem [shape: f32[128,128], index: 9, kind: input, shape index: {}]   ;;  %s4059_s11 = inlined_call_operand.vmem [shape: f32[128,128], index: 11, kind: input, shape index: {}]   ;;  %s4060_s10 = inlined_call_operand.vmem [shape: f32[1,128], index: 10, kind: input, shape index: {}]   ;;  %s4061_s13 = inlined_call_operand.vmem [shape: f32[128,128], index: 13, kind: input, shape index: {}]   ;;  %s4062_s12 = inlined_call_operand.vmem [shape: f32[1,128], index: 12, kind: input, shape index: {}]   ;;  %s4063_s17 = inlined_call_operand.vmem [shape: f32[128,128], index: 17, kind: output, shape index: {0}]   ;;  %s4064_s4 = inlined_call_operand.vmem [shape: f32[8,128], index: 4, kind: input, shape index: {}]   ;;  %s4065_s15 = inlined_call_operand.vmem [shape: f32[128,128], index: 15, kind: input, shape index: {}]   ;;  %s4066_s14 = inlined_call_operand.vmem [shape: f32[1,128], index: 14, kind: input, shape index: {}]   ;;  %s4067_s16 = inlined_call_operand.vmem [shape: f32[1,128], index: 16, kind: input, shape index: {}]   ;;  %s4068_s18 = inlined_call_operand.vmem [shape: f32[8,128], index: 18, kind: output, shape index: {1}]  }
   0x1   :  { %4091 = sst [smem:[#allocation15_spill]] %s4050_s0  ;;  %v122_v41 = vld [vmem:[%s4053_s5] sm:$0xff]  ;;  %v123_v42 = vld [vmem:[%s4053_s5 + $0x8] sm:$0xff]  ;;  %v124_v43 = vld [vmem:[%s4053_s5 + $0x10] sm:$0xff] }
   0x2   :  { %4092 = sst [smem:[#allocation16_spill]] %s4051_s2  ;;  %s4094_s29 = sld [smem:[#allocation15_spill]]  ;;  %v2699_v44 = vpack.c.bf16 %v123_v42, %v122_v41  ;;  %v125_v45 = vld [vmem:[%s4053_s5 + $0x18] sm:$0xff]  ;;  %v126_v47 = vld [vmem:[%s4053_s5 + $0x20] sm:$0xff]  ;;  %v127_v48 = vld [vmem:[%s4053_s5 + $0x28] sm:$0xff] }
   0x3   :  { %4093 = sst [smem:[#allocation17_spill]] %s4052_s3  ;;  %s4095_s27 = sld [smem:[#allocation16_spill]]  ;;  %v2703_v46 = vpack.c.bf16 %v125_v45, %v124_v43  ;;  %v2707_v49 = vpack.c.bf16 %v127_v48, %v126_v47  ;;  %v128_v50 = vld [vmem:[%s4053_s5 + $0x30] sm:$0xff]  ;;  %v129_v51 = vld [vmem:[%s4053_s5 + $0x38] sm:$0xff]  ;;  %v130_v53 = vld [vmem:[%s4053_s5 + $0x40] sm:$0xff] }
   0x4   :  { %v2711_v52 = vpack.c.bf16 %v129_v51, %v128_v50  ;;  %v131_v54 = vld [vmem:[%s4053_s5 + $0x48] sm:$0xff]  ;;  %v132_v56 = vld [vmem:[%s4053_s5 + $0x50] sm:$0xff]  ;;  %v133_v57 = vld [vmem:[%s4053_s5 + $0x58] sm:$0xff] }
   0x5   :  { %v2715_v55 = vpack.c.bf16 %v131_v54, %v130_v53  ;;  %v2719_v58 = vpack.c.bf16 %v133_v57, %v132_v56  ;;  %v134_v59 = vld [vmem:[%s4053_s5 + $0x60] sm:$0xff]  ;;  %v135_v60 = vld [vmem:[%s4053_s5 + $0x68] sm:$0xff]  ;;  %v3348_v57 = vld [vmem:[%s4054_s1 + $0x30] sm:$0xff] }
   0x6   :  { %v2723_v61 = vpack.c.bf16 %v135_v60, %v134_v59  ;;  %v3307_v62 = vld [vmem:[%s4054_s1 + $0x8] sm:$0xff]  ;;  %v3312_v63 = vld [vmem:[%s4054_s1] sm:$0xff] }
   0x7   :  { %v3331_v45 = vld [vmem:[%s4054_s1 + $0x28] sm:$0xff]  ;;  %v3336_v48 = vld [vmem:[%s4054_s1 + $0x20] sm:$0xff] }
   0x8   :  { %v3067_v0 = vld [vmem:[%s4094_s29] sm:$0xff]  ;;  %v3072_v1 = vld [vmem:[%s4094_s29 + $0x8] sm:$0xff]  ;;  %v3077_v2 = vld [vmem:[%s4094_s29 + $0x10] sm:$0xff] }
   0x9   :  { %v2635_v3 = vpack.c.bf16 %v3072_v1, %v3067_v0  ;;  %v3084_v4 = vld [vmem:[%s4094_s29 + $0x18] sm:$0xff]  ;;  %v3091_v6 = vld [vmem:[%s4094_s29 + $0x20] sm:$0xff]  ;;  %v3096_v7 = vld [vmem:[%s4094_s29 + $0x28] sm:$0xff] }
   0xa   :  { %v2639_v5 = vpack.c.bf16 %v3084_v4, %v3077_v2  ;;  %v2643_v8 = vpack.c.bf16 %v3096_v7, %v3091_v6  ;;  %v3103_v9 = vld [vmem:[%s4095_s27] sm:$0xff]  ;;  %v3108_v10 = vld [vmem:[%s4094_s29 + $0x30] sm:$0xff]  ;;  %v3113_v11 = vld [vmem:[%s4094_s29 + $0x38] sm:$0xff] }
   0xb   :  { %2636 = vmatprep.subr.bf16.mxu0 %v2635_v3  ;;  %2114 = vmatprep.mubr.f32.mxu0 %v3103_v9  ;;  %v2647_v12 = vpack.c.bf16 %v3113_v11, %v3108_v10  ;;  %v3121_v13 = vld [vmem:[%s4094_s29 + $0x40] sm:$0xff]  ;;  %v3126_v14 = vld [vmem:[%s4094_s29 + $0x48] sm:$0xff]  ;;  %v3133_v16 = vld [vmem:[%s4094_s29 + $0x50] sm:$0xff] }
   0xc   :  { %2638 = vmatpush3.bf16.msra.mxu0 %v2635_v3  ;;  %v2651_v15 = vpack.c.bf16 %v3126_v14, %v3121_v13  ;;  %v3138_v17 = vld [vmem:[%s4094_s29 + $0x58] sm:$0xff]  ;;  %v3145_v19 = vld [vmem:[%s4094_s29 + $0x60] sm:$0xff]  ;;  %v3150_v20 = vld [vmem:[%s4094_s29 + $0x68] sm:$0xff] }
   0xd   :  { %2640 = vmatprep.subr.bf16.mxu0 %v2639_v5  ;;  %v2655_v18 = vpack.c.bf16 %v3138_v17, %v3133_v16  ;;  %v2659_v21 = vpack.c.bf16 %v3150_v20, %v3145_v19  ;;  %v3157_v22 = vld [vmem:[%s4094_s29 + $0x70] sm:$0xff]  ;;  %v3162_v23 = vld [vmem:[%s4094_s29 + $0x78] sm:$0xff]  ;;  %v3169_v25 = vld [vmem:[%s4095_s27 + $0x8] sm:$0xff]  ;;  %s4096_s29 = sld [smem:[#allocation17_spill]] }
   0xe   :  { %v2663_v24 = vpack.c.bf16 %v3162_v23, %v3157_v22  ;;  %v3174_v26 = vld [vmem:[%s4095_s27 + $0x10] sm:$0xff]  ;;  %v3181_v27 = vld [vmem:[%s4095_s27 + $0x18] sm:$0xff]  ;;  %v3186_v28 = vld [vmem:[%s4095_s27 + $0x20] sm:$0xff] }
   0xf   :  { %v3193_v29 = vld [vmem:[%s4095_s27 + $0x28] sm:$0xff]  ;;  %v3198_v30 = vld [vmem:[%s4095_s27 + $0x30] sm:$0xff]  ;;  %v3205_v31 = vld [vmem:[%s4095_s27 + $0x38] sm:$0xff] }
  0x10   :  { %2642 = vmatpush3.bf16.msra.mxu0 %v2639_v5  ;;  %v3210_v32 = vld [vmem:[%s4095_s27 + $0x40] sm:$0xff]  ;;  %v3217_v33 = vld [vmem:[%s4095_s27 + $0x48] sm:$0xff]  ;;  %v3222_v34 = vld [vmem:[%s4095_s27 + $0x50] sm:$0xff] }
  0x11   :  { %2644 = vmatprep.subr.bf16.mxu0 %v2643_v8  ;;  %v3229_v35 = vld [vmem:[%s4095_s27 + $0x58] sm:$0xff]  ;;  %v3234_v36 = vld [vmem:[%s4095_s27 + $0x60] sm:$0xff]  ;;  %v3241_v37 = vld [vmem:[%s4095_s27 + $0x68] sm:$0xff] }
  0x12   :  { %v3246_v38 = vld [vmem:[%s4095_s27 + $0x70] sm:$0xff]  ;;  %v3253_v39 = vld [vmem:[%s4095_s27 + $0x78] sm:$0xff] }
  0x13   :  { %v3259_v40 = vld [vmem:[%s4096_s29] sm:$0xff] }
  0x14   :  { %2646 = vmatpush3.bf16.msra.mxu0 %v2643_v8  ;;  %2170 = vmatprep.mubr.f32.mxu1 %v3259_v40 }
  0x15   :  { %2648 = vmatprep.subr.bf16.mxu0 %v2647_v12 }
  0x18   :  { %2650 = vmatpush3.bf16.msra.mxu0 %v2647_v12 }
  0x19   :  { %2652 = vmatprep.subr.bf16.mxu0 %v2651_v15 }
  0x1c   :  { %2654 = vmatpush3.bf16.msra.mxu0 %v2651_v15  ;;  %v3319_v15 = vld [vmem:[%s4054_s1 + $0x18] sm:$0xff] }
  0x1d   :  { %2656 = vmatprep.subr.bf16.mxu0 %v2655_v18 }
  0x20   :  { %2658 = vmatpush3.bf16.msra.mxu0 %v2655_v18 }
  0x21   :  { %2660 = vmatprep.subr.bf16.mxu0 %v2659_v21 }
  0x24   :  { %2662 = vmatpush3.bf16.msra.mxu0 %v2659_v21  ;;  %v3324_v21 = vld [vmem:[%s4054_s1 + $0x10] sm:$0xff] }
  0x25   :  { %2664 = vmatprep.subr.bf16.mxu0 %v2663_v24 }
  0x28   :  { %2666 = vmatpush3.bf16.msra.mxu0 %v2663_v24 }
  0x29   :  { %2700 = vmatprep.subr.bf16.mxu0 %v2699_v44 }
  0x2b   :  { %2115 = vmatmul.mubr.f32.vlgmr.msra.gmra.mrb[0].mxu0 %v3169_v25 }
  0x2c   :  { %2117 = vmatprep.mubr.f32.mxu0 %v3174_v26  ;;  %2702 = vmatpush3.bf16.msra.mxu0 %v2699_v44 }
  0x2d   :  { %2704 = vmatprep.subr.bf16.mxu0 %v2703_v46 }
  0x2f   :  { %2118 = vmatmul.mubr.f32.gmra.mrb[2].mxu0 %v3181_v27 }
  0x30   :  { %2120 = vmatprep.mubr.f32.mxu0 %v3186_v28  ;;  %2706 = vmatpush3.bf16.msra.mxu0 %v2703_v46 }
  0x31   :  { %2708 = vmatprep.subr.bf16.mxu0 %v2707_v49 }
  0x33   :  { %2121 = vmatmul.mubr.f32.gmra.mrb[4].mxu0 %v3193_v29 }
  0x34   :  { %2123 = vmatprep.mubr.f32.mxu0 %v3198_v30  ;;  %2710 = vmatpush3.bf16.msra.mxu0 %v2707_v49 }
  0x35   :  { %2712 = vmatprep.subr.bf16.mxu0 %v2711_v52 }
  0x37   :  { %2124 = vmatmul.mubr.f32.gmra.mrb[6].mxu0 %v3205_v31 }
  0x38   :  { %2126 = vmatprep.mubr.f32.mxu0 %v3210_v32  ;;  %2714 = vmatpush3.bf16.msra.mxu0 %v2711_v52 }
  0x39   :  { %2716 = vmatprep.subr.bf16.mxu0 %v2715_v55 }
  0x3b   :  { %2127 = vmatmul.mubr.f32.gmra.mrb[8].mxu0 %v3217_v33 }
  0x3c   :  { %2129 = vmatprep.mubr.f32.mxu0 %v3222_v34  ;;  %2718 = vmatpush3.bf16.msra.mxu0 %v2715_v55  ;;  %v3343_v55 = vld [vmem:[%s4054_s1 + $0x38] sm:$0xff] }
  0x3d   :  { %2720 = vmatprep.subr.bf16.mxu0 %v2719_v58 }
  0x3f   :  { %2130 = vmatmul.mubr.f32.gmra.mrb[10].mxu0 %v3229_v35 }
  0x40   :  { %2132 = vmatprep.mubr.f32.mxu0 %v3234_v36  ;;  %2722 = vmatpush3.bf16.msra.mxu0 %v2719_v58 }
  0x41   :  { %2724 = vmatprep.subr.bf16.mxu0 %v2723_v61 }
  0x43   :  { %2133 = vmatmul.mubr.f32.gmra.mrb[12].mxu0 %v3241_v37 }
  0x44   :  { %2135 = vmatprep.mubr.f32.mxu0 %v3246_v38  ;;  %2726 = vmatpush3.bf16.msra.mxu0 %v2723_v61 }
  0x47   :  { %2136 = vmatmul.mubr.f32.gmra.mrb[14].mxu0 %v3253_v39 }
  0xfe   :  { %v2116_v3 = vpop.f32.mrb[0].mxu0 }
  0xff   :  { %v228_v5 = vadd.f32 %v2116_v3, %v3307_v62  ;;  %v222_v8 = vpop.f32.mrb[1].mxu0 }
 0x100   :  { %v223_v12 = vadd.f32 %v222_v8, %v3312_v63  ;;  %v3355_v8 = vld [vmem:[%s4054_s1 + $0x48] sm:$0xff] }
 0x101   :  { %v302_v18 = vmax.f32 %v228_v5, 0.0 }
 0x102   :  { %v301_v24 = vmax.f32 %v223_v12, 0.0  ;;  %v2119_v41 = vpop.f32.mrb[2].mxu0 }
 0x103   :  { %v238_v42 = vadd.f32 %v2119_v41, %v3319_v15  ;;  %v232_v43 = vpop.f32.mrb[3].mxu0 }
 0x104   :  { %v233_v44 = vadd.f32 %v232_v43, %v3324_v21  ;;  %v2667_v46 = vpack.c.bf16 %v302_v18, %v301_v24  ;;  %v3360_v18 = vld [vmem:[%s4054_s1 + $0x40] sm:$0xff] }
 0x105   :  { %v304_v47 = vmax.f32 %v238_v42, 0.0 }
 0x106   :  { %v303_v49 = vmax.f32 %v233_v44, 0.0  ;;  %v2122_v50 = vpop.f32.mrb[4].mxu0  ;;  %2668 = vmatprep.subr.bf16.mxu1 %v2667_v46 }
 0x107   :  { %v248_v51 = vadd.f32 %v2122_v50, %v3331_v45  ;;  %v242_v52 = vpop.f32.mrb[5].mxu0  ;;  %2670 = vmatpush3.bf16.msra.mxu1 %v2667_v46  ;;  %v3372_v50 = vld [vmem:[%s4054_s1 + $0x50] sm:$0xff] }
 0x108   :  { %v2671_v53 = vpack.c.bf16 %v304_v47, %v303_v49  ;;  %v243_v54 = vadd.f32 %v242_v52, %v3336_v48  ;;  %v3367_v47 = vld [vmem:[%s4054_s1 + $0x58] sm:$0xff] }
 0x109   :  { %v306_v56 = vmax.f32 %v248_v51, 0.0 }
 0x10a   :  { %v305_v58 = vmax.f32 %v243_v54, 0.0  ;;  %v2125_v59 = vpop.f32.mrb[6].mxu0  ;;  %2672 = vmatprep.subr.bf16.mxu1 %v2671_v53 }
 0x10b   :  { %v258_v60 = vadd.f32 %v2125_v59, %v3343_v55  ;;  %v252_v61 = vpop.f32.mrb[7].mxu0  ;;  %2674 = vmatpush3.bf16.msra.mxu1 %v2671_v53  ;;  %v3379_v59 = vld [vmem:[%s4054_s1 + $0x68] sm:$0xff] }
 0x10c   :  { %v2675_v3 = vpack.c.bf16 %v306_v56, %v305_v58  ;;  %v253_v5 = vadd.f32 %v252_v61, %v3348_v57  ;;  %v3384_v61 = vld [vmem:[%s4054_s1 + $0x60] sm:$0xff] }
 0x10d   :  { %v308_v12 = vmax.f32 %v258_v60, 0.0 }
 0x10e   :  { %v307_v24 = vmax.f32 %v253_v5, 0.0  ;;  %v2128_v41 = vpop.f32.mrb[8].mxu0  ;;  %2676 = vmatprep.subr.bf16.mxu1 %v2675_v3 }
 0x10f   :  { %v268_v42 = vadd.f32 %v2128_v41, %v3355_v8  ;;  %v262_v43 = vpop.f32.mrb[9].mxu0  ;;  %2678 = vmatpush3.bf16.msra.mxu1 %v2675_v3 }
 0x110   :  { %v2679_v44 = vpack.c.bf16 %v308_v12, %v307_v24  ;;  %v263_v46 = vadd.f32 %v262_v43, %v3360_v18  ;;  %v3391_v43 = vld [vmem:[%s4054_s1 + $0x78] sm:$0xff] }
 0x111   :  { %v310_v49 = vmax.f32 %v268_v42, 0.0 }
 0x112   :  { %v309_v51 = vmax.f32 %v263_v46, 0.0  ;;  %v2131_v52 = vpop.f32.mrb[10].mxu0  ;;  %2680 = vmatprep.subr.bf16.mxu1 %v2679_v44  ;;  %v3396_v46 = vld [vmem:[%s4054_s1 + $0x70] sm:$0xff] }
 0x113   :  { %v278_v53 = vadd.f32 %v2131_v52, %v3367_v47  ;;  %v272_v54 = vpop.f32.mrb[11].mxu0  ;;  %2682 = vmatpush3.bf16.msra.mxu1 %v2679_v44 }
 0x114   :  { %v2683_v56 = vpack.c.bf16 %v310_v49, %v309_v51  ;;  %v273_v58 = vadd.f32 %v272_v54, %v3372_v50 }
 0x115   :  { %v312_v60 = vmax.f32 %v278_v53, 0.0 }
 0x116   :  { %v311_v3 = vmax.f32 %v273_v58, 0.0  ;;  %v2134_v5 = vpop.f32.mrb[12].mxu0  ;;  %2684 = vmatprep.subr.bf16.mxu1 %v2683_v56 }
 0x117   :  { %v288_v12 = vadd.f32 %v2134_v5, %v3379_v59  ;;  %v282_v24 = vpop.f32.mrb[13].mxu0  ;;  %2686 = vmatpush3.bf16.msra.mxu1 %v2683_v56  ;;  %v3403_v5 = vld [vmem:[%s4096_s29 + $0x8] sm:$0xff] }
 0x118   :  { %v2687_v41 = vpack.c.bf16 %v312_v60, %v311_v3  ;;  %v283_v42 = vadd.f32 %v282_v24, %v3384_v61  ;;  %v3415_v24 = vld [vmem:[%s4096_s29 + $0x18] sm:$0xff] }
 0x119   :  { %v314_v44 = vmax.f32 %v288_v12, 0.0  ;;  %v3408_v12 = vld [vmem:[%s4096_s29 + $0x10] sm:$0xff]  ;;  %4097 = vst [vmem:[#allocation2_spill] sm:$0xff] %v3415_v24 }
 0x11a   :  { %v313_v49 = vmax.f32 %v283_v42, 0.0  ;;  %v2137_v51 = vpop.f32.mrb[14].mxu0  ;;  %2688 = vmatprep.subr.bf16.mxu1 %v2687_v41  ;;  %v3427_v42 = vld [vmem:[%s4096_s29 + $0x28] sm:$0xff] }
 0x11b   :  { %v298_v52 = vadd.f32 %v2137_v51, %v3391_v43  ;;  %v292_v53 = vpop.f32.mrb[15].mxu0  ;;  %2690 = vmatpush3.bf16.msra.mxu1 %v2687_v41  ;;  %v3420_v41 = vld [vmem:[%s4096_s29 + $0x20] sm:$0xff]  ;;  %4099 = vst [vmem:[#allocation4_spill] sm:$0xff] %v3427_v42 }
 0x11c   :  { %v2691_v54 = vpack.c.bf16 %v314_v44, %v313_v49  ;;  %v293_v56 = vadd.f32 %v292_v53, %v3396_v46  ;;  %4098 = vst [vmem:[#allocation3_spill] sm:$0xff] %v3420_v41  ;;  %v3432_v44 = vld [vmem:[%s4096_s29 + $0x30] sm:$0xff]  ;;  %v3439_v49 = vld [vmem:[%s4096_s29 + $0x38] sm:$0xff]  ;;  %v3444_v51 = vld [vmem:[%s4096_s29 + $0x40] sm:$0xff] }
 0x11d   :  { %v316_v58 = vmax.f32 %v298_v52, 0.0  ;;  %4100 = vst [vmem:[#allocation5_spill] sm:$0xff] %v3432_v44  ;;  %4101 = vst [vmem:[#allocation6_spill] sm:$0xff] %v3439_v49  ;;  %v3451_v52 = vld [vmem:[%s4096_s29 + $0x48] sm:$0xff]  ;;  %v3456_v53 = vld [vmem:[%s4096_s29 + $0x50] sm:$0xff] }
 0x11e   :  { %v315_v60 = vmax.f32 %v293_v56, 0.0  ;;  %2692 = vmatprep.subr.bf16.mxu1 %v2691_v54  ;;  %4102 = vst [vmem:[#allocation7_spill] sm:$0xff] %v3444_v51  ;;  %4103 = vst [vmem:[#allocation8_spill] sm:$0xff] %v3451_v52  ;;  %v3468_v56 = vld [vmem:[%s4096_s29 + $0x60] sm:$0xff] }
 0x11f   :  { %2694 = vmatpush3.bf16.msra.mxu1 %v2691_v54  ;;  %4104 = vst [vmem:[#allocation9_spill] sm:$0xff] %v3456_v53  ;;  %v3463_v54 = vld [vmem:[%s4096_s29 + $0x58] sm:$0xff]  ;;  %4106 = vst [vmem:[#allocation11_spill] sm:$0xff] %v3468_v56 }
 0x120   :  { %v2695_v3 = vpack.c.bf16 %v316_v58, %v315_v60  ;;  %4105 = vst [vmem:[#allocation10_spill] sm:$0xff] %v3463_v54  ;;  %v3475_v58 = vld [vmem:[%s4096_s29 + $0x68] sm:$0xff]  ;;  %v3480_v60 = vld [vmem:[%s4096_s29 + $0x70] sm:$0xff] }
 0x121   :  { %4107 = vst [vmem:[#allocation12_spill] sm:$0xff] %v3475_v58  ;;  %4108 = vst [vmem:[#allocation13_spill] sm:$0xff] %v3480_v60 }
 0x122   :  { %2696 = vmatprep.subr.bf16.mxu1 %v2695_v3 }
 0x123   :  { %2698 = vmatpush3.bf16.msra.mxu1 %v2695_v3  ;;  %v3487_v3 = vld [vmem:[%s4096_s29 + $0x78] sm:$0xff] }
 0x124   :  { %4109 = vst [vmem:[#allocation14_spill] sm:$0xff] %v3487_v3 }
 0x126   :  { %2171 = vmatmul.mubr.f32.vlgmr.msra.gmra.mrb[0].mxu1 %v3403_v5 }
 0x127   :  { %2173 = vmatprep.mubr.f32.mxu1 %v3408_v12 }
 0x12a   :  { %2174 = vmatmul.mubr.f32.gmra.mrb[2].mxu1 %v3415_v24 }
 0x12b   :  { %2176 = vmatprep.mubr.f32.mxu1 %v3420_v41 }
 0x12e   :  { %2177 = vmatmul.mubr.f32.gmra.mrb[4].mxu1 %v3427_v42 }
 0x12f   :  { %2179 = vmatprep.mubr.f32.mxu1 %v3432_v44 }
 0x132   :  { %2180 = vmatmul.mubr.f32.gmra.mrb[6].mxu1 %v3439_v49 }
 0x133   :  { %2182 = vmatprep.mubr.f32.mxu1 %v3444_v51  ;;  %v142_v51 = vld [vmem:[%s4055_s7 + $0x18] sm:$0xff] }
 0x136   :  { %2183 = vmatmul.mubr.f32.gmra.mrb[8].mxu1 %v3451_v52 }
 0x137   :  { %2185 = vmatprep.mubr.f32.mxu1 %v3456_v53 }
 0x13a   :  { %2186 = vmatmul.mubr.f32.gmra.mrb[10].mxu1 %v3463_v54  ;;  %v137_v54 = vld [vmem:[%s4053_s5 + $0x78] sm:$0xff] }
 0x13b   :  { %2188 = vmatprep.mubr.f32.mxu1 %v3468_v56  ;;  %v136_v56 = vld [vmem:[%s4053_s5 + $0x70] sm:$0xff] }
 0x13c   :  { %v2727_v53 = vpack.c.bf16 %v137_v54, %v136_v56  ;;  %v144_v56 = vld [vmem:[%s4055_s7 + $0x28] sm:$0xff] }
 0x13e   :  { %2189 = vmatmul.mubr.f32.gmra.mrb[12].mxu1 %v3475_v58  ;;  %2728 = vmatprep.subr.bf16.mxu0 %v2727_v53  ;;  %v140_v58 = vld [vmem:[%s4055_s7 + $0x8] sm:$0xff] }
 0x13f   :  { %2191 = vmatprep.mubr.f32.mxu1 %v3480_v60  ;;  %2730 = vmatpush3.bf16.msra.mxu0 %v2727_v53  ;;  %v139_v60 = vld [vmem:[%s4055_s7] sm:$0xff] }
 0x140   :  { %v2731_v52 = vpack.c.bf16 %v140_v58, %v139_v60  ;;  %v143_v53 = vld [vmem:[%s4055_s7 + $0x20] sm:$0xff]  ;;  %v145_v58 = vld [vmem:[%s4055_s7 + $0x30] sm:$0xff] }
 0x141   :  { %v2739_v49 = vpack.c.bf16 %v144_v56, %v143_v53  ;;  %v149_v56 = vld [vmem:[%s4055_s7 + $0x50] sm:$0xff] }
 0x142   :  { %2192 = vmatmul.mubr.f32.gmra.mrb[14].mxu1 %v3487_v3  ;;  %v141_v3 = vld [vmem:[%s4055_s7 + $0x10] sm:$0xff]  ;;  %2732 = vmatprep.subr.bf16.mxu1 %v2731_v52 }
 0x143   :  { %v2735_v54 = vpack.c.bf16 %v142_v51, %v141_v3  ;;  %2734 = vmatpush3.bf16.msra.mxu1 %v2731_v52  ;;  %v146_v51 = vld [vmem:[%s4055_s7 + $0x38] sm:$0xff]  ;;  %v147_v3 = vld [vmem:[%s4055_s7 + $0x40] sm:$0xff]  ;;  %v148_v52 = vld [vmem:[%s4055_s7 + $0x48] sm:$0xff] }
 0x144   :  { %v2743_v60 = vpack.c.bf16 %v146_v51, %v145_v58  ;;  %v2747_v53 = vpack.c.bf16 %v148_v52, %v147_v3  ;;  %v151_v51 = vld [vmem:[%s4055_s7 + $0x60] sm:$0xff] }
 0x145   :  { %2736 = vmatprep.subr.bf16.mxu1 %v2735_v54 }
 0x147   :  { %2738 = vmatpush3.bf16.msra.mxu1 %v2735_v54  ;;  %v150_v54 = vld [vmem:[%s4055_s7 + $0x58] sm:$0xff] }
 0x148   :  { %2740 = vmatprep.subr.bf16.mxu1 %v2739_v49  ;;  %v2751_v58 = vpack.c.bf16 %v150_v54, %v149_v56 }
 0x14b   :  { %2742 = vmatpush3.bf16.msra.mxu1 %v2739_v49  ;;  %v152_v49 = vld [vmem:[%s4055_s7 + $0x68] sm:$0xff] }
 0x14c   :  { %2744 = vmatprep.subr.bf16.mxu1 %v2743_v60  ;;  %v2755_v3 = vpack.c.bf16 %v152_v49, %v151_v51 }
 0x14f   :  { %2746 = vmatpush3.bf16.msra.mxu1 %v2743_v60 }
 0x150   :  { %2748 = vmatprep.subr.bf16.mxu1 %v2747_v53 }
 0x153   :  { %2750 = vmatpush3.bf16.msra.mxu1 %v2747_v53 }
 0x154   :  { %2752 = vmatprep.subr.bf16.mxu1 %v2751_v58 }
 0x157   :  { %2754 = vmatpush3.bf16.msra.mxu1 %v2751_v58 }
 0x158   :  { %2756 = vmatprep.subr.bf16.mxu1 %v2755_v3 }
 0x15b   :  { %2758 = vmatpush3.bf16.msra.mxu1 %v2755_v3 }
 0x1f9   :  { %v2172_v52 = vpop.f32.mrb[0].mxu1 }
 0x1fa   :  { %v383_v44 = vpop.f32.mrb[1].mxu1  ;;  %v463_v56 = vadd.f32 %v2172_v52, %v3072_v1 }
 0x1fb   :  { %v462_v60 = vadd.f32 %v383_v44, %v3067_v0 }
 0x1fd   :  { %v2175_v54 = vpop.f32.mrb[2].mxu1  ;;  %2226 = vmatprep.mubr.f32.mxu0 %v462_v60 }
 0x1fe   :  { %v393_v42 = vpop.f32.mrb[3].mxu1  ;;  %2227 = vmatmul.mubr.f32.vlgmr.msra.gmra.mrb[16].mxu0 %v463_v56  ;;  %v465_v24 = vadd.f32 %v2175_v54, %v3084_v4 }
 0x1ff   :  { %v464_v41 = vadd.f32 %v393_v42, %v3077_v2 }
 0x201   :  { %v2178_v53 = vpop.f32.mrb[4].mxu1  ;;  %2229 = vmatprep.mubr.f32.mxu0 %v464_v41 }
 0x202   :  { %v403_v51 = vpop.f32.mrb[5].mxu1  ;;  %2230 = vmatmul.mubr.f32.gmra.mrb[18].mxu0 %v465_v24  ;;  %v467_v49 = vadd.f32 %v2178_v53, %v3096_v7 }
 0x203   :  { %v466_v58 = vadd.f32 %v403_v51, %v3091_v6 }
 0x205   :  { %v2181_v3 = vpop.f32.mrb[6].mxu1  ;;  %2232 = vmatprep.mubr.f32.mxu0 %v466_v58 }
 0x206   :  { %v413_v0 = vpop.f32.mrb[7].mxu1  ;;  %2233 = vmatmul.mubr.f32.gmra.mrb[20].mxu0 %v467_v49  ;;  %v469_v44 = vadd.f32 %v2181_v3, %v3113_v11 }
 0x207   :  { %v468_v1 = vadd.f32 %v413_v0, %v3108_v10 }
 0x209   :  { %v2184_v52 = vpop.f32.mrb[8].mxu1  ;;  %2235 = vmatprep.mubr.f32.mxu0 %v468_v1 }
 0x20a   :  { %v423_v2 = vpop.f32.mrb[9].mxu1  ;;  %2236 = vmatmul.mubr.f32.gmra.mrb[22].mxu0 %v469_v44  ;;  %v471_v24 = vadd.f32 %v2184_v52, %v3126_v14 }
 0x20b   :  { %v470_v4 = vadd.f32 %v423_v2, %v3121_v13 }
 0x20d   :  { %v2187_v41 = vpop.f32.mrb[10].mxu1  ;;  %2238 = vmatprep.mubr.f32.mxu0 %v470_v4 }
 0x20e   :  { %v433_v6 = vpop.f32.mrb[11].mxu1  ;;  %2239 = vmatmul.mubr.f32.gmra.mrb[24].mxu0 %v471_v24  ;;  %v473_v42 = vadd.f32 %v2187_v41, %v3138_v17  ;;  %v154_v17 = vld [vmem:[%s4055_s7 + $0x78] sm:$0xff] }
 0x20f   :  { %v472_v7 = vadd.f32 %v433_v6, %v3133_v16  ;;  %v153_v16 = vld [vmem:[%s4055_s7 + $0x70] sm:$0xff] }
 0x211   :  { %v2190_v60 = vpop.f32.mrb[12].mxu1  ;;  %2241 = vmatprep.mubr.f32.mxu0 %v472_v7 }
 0x212   :  { %v443_v10 = vpop.f32.mrb[13].mxu1  ;;  %2242 = vmatmul.mubr.f32.gmra.mrb[26].mxu0 %v473_v42  ;;  %v475_v56 = vadd.f32 %v2190_v60, %v3150_v20  ;;  %v1769_v20 = vld [vmem:[%s4056_s6] ss:$0 sm:$0xff] }
 0x213   :  { %v474_v11 = vadd.f32 %v443_v10, %v3145_v19  ;;  %v2759_v19 = vpack.c.bf16 %v154_v17, %v153_v16 }
 0x215   :  { %v2193_v54 = vpop.f32.mrb[14].mxu1  ;;  %2244 = vmatprep.mubr.f32.mxu0 %v474_v11  ;;  %2760 = vmatprep.subr.bf16.mxu1 %v2759_v19 }
 0x216   :  { %v453_v13 = vpop.f32.mrb[15].mxu1  ;;  %2245 = vmatmul.mubr.f32.gmra.mrb[28].mxu0 %v475_v56  ;;  %v477_v53 = vadd.f32 %v2193_v54, %v3162_v23  ;;  %2762 = vmatpush3.bf16.msra.mxu1 %v2759_v19 }
 0x217   :  { %v476_v14 = vadd.f32 %v453_v13, %v3157_v22 }
 0x219   :  { %2247 = vmatprep.mubr.f32.mxu0 %v476_v14 }
 0x21a   :  { %2248 = vmatmul.mubr.f32.gmra.mrb[30].mxu0 %v477_v53 }
 0x21b   :  { %2338 = vmatprep.mubr.f32.mxu0 %v3103_v9 }
 0x2d1   :  { %v2228_v22 = vpop.f32.mrb[16].mxu0 }
 0x2d2   :  { %v556_v23 = vadd.f32 %v2228_v22, %v1769_v20  ;;  %v550_v51 = vpop.f32.mrb[17].mxu0 }
 0x2d3   :  { %v551_v58 = vadd.f32 %v1769_v20, %v550_v51 }
 0x2d4   :  { %v630_v3 = vmax.f32 %v556_v23, 0.0 }
 0x2d5   :  { %v629_v9 = vmax.f32 %v551_v58, 0.0  ;;  %v2231_v49 = vpop.f32.mrb[18].mxu0 }
 0x2d6   :  { %v566_v0 = vadd.f32 %v2231_v49, %v1769_v20  ;;  %v560_v1 = vpop.f32.mrb[19].mxu0 }
 0x2d7   :  { %v561_v44 = vadd.f32 %v1769_v20, %v560_v1  ;;  %2282 = vmatprep.mubr.f32.mxu1 %v629_v9 }
 0x2d8   :  { %2283 = vmatmul.mubr.f32.vlgmr.msra.gmra.mrb[16].mxu1 %v630_v3  ;;  %v632_v4 = vmax.f32 %v566_v0, 0.0 }
 0x2d9   :  { %v631_v52 = vmax.f32 %v561_v44, 0.0  ;;  %v2234_v2 = vpop.f32.mrb[20].mxu0 }
 0x2da   :  { %v576_v24 = vadd.f32 %v2234_v2, %v1769_v20  ;;  %v570_v41 = vpop.f32.mrb[21].mxu0 }
 0x2db   :  { %v571_v6 = vadd.f32 %v1769_v20, %v570_v41  ;;  %2285 = vmatprep.mubr.f32.mxu1 %v631_v52 }
 0x2dc   :  { %2286 = vmatmul.mubr.f32.gmra.mrb[18].mxu1 %v632_v4  ;;  %v634_v60 = vmax.f32 %v576_v24, 0.0 }
 0x2dd   :  { %v633_v7 = vmax.f32 %v571_v6, 0.0  ;;  %v2237_v42 = vpop.f32.mrb[22].mxu0 }
 0x2de   :  { %v586_v10 = vadd.f32 %v2237_v42, %v1769_v20  ;;  %v580_v11 = vpop.f32.mrb[23].mxu0 }
 0x2df   :  { %v581_v56 = vadd.f32 %v1769_v20, %v580_v11  ;;  %2288 = vmatprep.mubr.f32.mxu1 %v633_v7 }
 0x2e0   :  { %2289 = vmatmul.mubr.f32.gmra.mrb[20].mxu1 %v634_v60  ;;  %v636_v14 = vmax.f32 %v586_v10, 0.0  ;;  %v3568_v10 = vld [vmem:[%s4057_s8] ss:$0 sm:$0xff] }
 0x2e1   :  { %v635_v54 = vmax.f32 %v581_v56, 0.0  ;;  %v2240_v13 = vpop.f32.mrb[24].mxu0 }
 0x2e2   :  { %v596_v53 = vadd.f32 %v2240_v13, %v1769_v20  ;;  %v590_v16 = vpop.f32.mrb[25].mxu0 }
 0x2e3   :  { %v591_v17 = vadd.f32 %v1769_v20, %v590_v16  ;;  %2291 = vmatprep.mubr.f32.mxu1 %v635_v54 }
 0x2e4   :  { %2292 = vmatmul.mubr.f32.gmra.mrb[22].mxu1 %v636_v14  ;;  %v638_v23 = vmax.f32 %v596_v53, 0.0 }
 0x2e5   :  { %v637_v19 = vmax.f32 %v591_v17, 0.0  ;;  %v2243_v22 = vpop.f32.mrb[26].mxu0 }
 0x2e6   :  { %v606_v51 = vadd.f32 %v2243_v22, %v1769_v20  ;;  %v600_v58 = vpop.f32.mrb[27].mxu0 }
 0x2e7   :  { %v601_v9 = vadd.f32 %v1769_v20, %v600_v58  ;;  %2294 = vmatprep.mubr.f32.mxu1 %v637_v19 }
 0x2e8   :  { %2295 = vmatmul.mubr.f32.gmra.mrb[24].mxu1 %v638_v23  ;;  %v640_v0 = vmax.f32 %v606_v51, 0.0 }
 0x2e9   :  { %v639_v49 = vmax.f32 %v601_v9, 0.0  ;;  %v2246_v3 = vpop.f32.mrb[28].mxu0 }
 0x2ea   :  { %v616_v1 = vadd.f32 %v2246_v3, %v1769_v20  ;;  %v610_v44 = vpop.f32.mrb[29].mxu0 }
 0x2eb   :  { %v611_v52 = vadd.f32 %v1769_v20, %v610_v44  ;;  %2297 = vmatprep.mubr.f32.mxu1 %v639_v49 }
 0x2ec   :  { %2298 = vmatmul.mubr.f32.gmra.mrb[26].mxu1 %v640_v0  ;;  %v642_v24 = vmax.f32 %v616_v1, 0.0 }
 0x2ed   :  { %v641_v2 = vmax.f32 %v611_v52, 0.0  ;;  %v2249_v4 = vpop.f32.mrb[30].mxu0 }
 0x2ee   :  { %v626_v41 = vadd.f32 %v2249_v4, %v1769_v20  ;;  %v620_v6 = vpop.f32.mrb[31].mxu0 }
 0x2ef   :  { %v621_v7 = vadd.f32 %v1769_v20, %v620_v6  ;;  %2300 = vmatprep.mubr.f32.mxu1 %v641_v2 }
 0x2f0   :  { %2301 = vmatmul.mubr.f32.gmra.mrb[28].mxu1 %v642_v24  ;;  %v644_v60 = vmax.f32 %v626_v41, 0.0 }
 0x2f1   :  { %v643_v42 = vmax.f32 %v621_v7, 0.0 }
 0x2f3   :  { %2303 = vmatprep.mubr.f32.mxu1 %v643_v42 }
 0x2f4   :  { %2304 = vmatmul.mubr.f32.gmra.mrb[30].mxu1 %v644_v60 }
 0x2f5   :  { %2394 = vmatprep.mubr.f32.mxu1 %v3259_v40 }
 0x3ab   :  { %v2284_v11 = vpop.f32.mrb[16].mxu1 }
 0x3ac   :  { %v3571_v56 = vadd.f32 %v2284_v11, %v3568_v10  ;;  %v717_v54 = vpop.f32.mrb[17].mxu1 }
 0x3ad   :  { %v3574_v20 = vadd.f32 %v3568_v10, %v717_v54 }
 0x3ae   :  { %v797_v13 = vmax.f32 %v3571_v56, 0.0 }
 0x3af   :  { %v796_v14 = vmax.f32 %v3574_v20, 0.0  ;;  %v2287_v53 = vpop.f32.mrb[18].mxu1 }
 0x3b0   :  { %v3579_v40 = vadd.f32 %v2287_v53, %v3568_v10  ;;  %v727_v16 = vpop.f32.mrb[19].mxu1 }
 0x3b1   :  { %v2763_v17 = vpack.c.bf16 %v797_v13, %v796_v14  ;;  %v3586_v19 = vadd.f32 %v3568_v10, %v727_v16 }
 0x3b2   :  { %v799_v22 = vmax.f32 %v3579_v40, 0.0 }
 0x3b3   :  { %v798_v23 = vmax.f32 %v3586_v19, 0.0  ;;  %v2290_v51 = vpop.f32.mrb[20].mxu1  ;;  %2764 = vmatprep.subr.bf16.mxu0 %v2763_v17 }
 0x3b4   :  { %v3591_v58 = vadd.f32 %v2290_v51, %v3568_v10  ;;  %v737_v9 = vpop.f32.mrb[21].mxu1  ;;  %2766 = vmatpush3.bf16.msra.mxu0 %v2763_v17 }
 0x3b5   :  { %v2767_v49 = vpack.c.bf16 %v799_v22, %v798_v23  ;;  %v3598_v3 = vadd.f32 %v3568_v10, %v737_v9 }
 0x3b6   :  { %v801_v0 = vmax.f32 %v3591_v58, 0.0 }
 0x3b7   :  { %v800_v1 = vmax.f32 %v3598_v3, 0.0  ;;  %v2293_v44 = vpop.f32.mrb[22].mxu1  ;;  %2768 = vmatprep.subr.bf16.mxu0 %v2767_v49 }
 0x3b8   :  { %v3603_v52 = vadd.f32 %v2293_v44, %v3568_v10  ;;  %v747_v2 = vpop.f32.mrb[23].mxu1  ;;  %2770 = vmatpush3.bf16.msra.mxu0 %v2767_v49 }
 0x3b9   :  { %v2771_v4 = vpack.c.bf16 %v801_v0, %v800_v1  ;;  %v3610_v24 = vadd.f32 %v3568_v10, %v747_v2 }
 0x3ba   :  { %v4087_v41 = vmax.f32 %v3603_v52, 0.0  ;;  %v4124_v40 = vmax.f32 %v3603_v52, 0.0 }
 0x3bb   :  { %v4088_v6 = vmax.f32 %v3610_v24, 0.0  ;;  %v2296_v7 = vpop.f32.mrb[24].mxu1  ;;  %2772 = vmatprep.subr.bf16.mxu0 %v2771_v4  ;;  %v4123_v19 = vmax.f32 %v3610_v24, 0.0 }
 0x3bc   :  { %v3615_v42 = vadd.f32 %v2296_v7, %v3568_v10  ;;  %v757_v60 = vpop.f32.mrb[25].mxu1  ;;  %2774 = vmatpush3.bf16.msra.mxu0 %v2771_v4 }
 0x3bd   :  { %v2775_v11 = vpack.c.bf16 %v4087_v41, %v4088_v6  ;;  %v3622_v54 = vadd.f32 %v3568_v10, %v757_v60 }
 0x3be   :  { %v4085_v53 = vmax.f32 %v3615_v42, 0.0  ;;  %v4126_v58 = vmax.f32 %v3615_v42, 0.0 }
 0x3bf   :  { %v4086_v16 = vmax.f32 %v3622_v54, 0.0  ;;  %v2299_v17 = vpop.f32.mrb[26].mxu1  ;;  %2776 = vmatprep.subr.bf16.mxu0 %v2775_v11  ;;  %v4125_v3 = vmax.f32 %v3622_v54, 0.0 }
 0x3c0   :  { %v3627_v51 = vadd.f32 %v2299_v17, %v3568_v10  ;;  %v767_v9 = vpop.f32.mrb[27].mxu1  ;;  %2778 = vmatpush3.bf16.msra.mxu0 %v2775_v11 }
 0x3c1   :  { %v2779_v49 = vpack.c.bf16 %v4085_v53, %v4086_v16  ;;  %v3634_v44 = vadd.f32 %v3568_v10, %v767_v9 }
 0x3c2   :  { %v4089_v2 = vmax.f32 %v3627_v51, 0.0  ;;  %v4128_v52 = vmax.f32 %v3627_v51, 0.0 }
 0x3c3   :  { %v4090_v4 = vmax.f32 %v3634_v44, 0.0  ;;  %v2302_v7 = vpop.f32.mrb[28].mxu1  ;;  %2780 = vmatprep.subr.bf16.mxu0 %v2779_v49  ;;  %v4127_v24 = vmax.f32 %v3634_v44, 0.0 }
 0x3c4   :  { %v3639_v60 = vadd.f32 %v2302_v7, %v3568_v10  ;;  %v777_v17 = vpop.f32.mrb[29].mxu1  ;;  %2782 = vmatpush3.bf16.msra.mxu0 %v2779_v49 }
 0x3c5   :  { %v2783_v11 = vpack.c.bf16 %v4089_v2, %v4090_v4  ;;  %v3646_v53 = vadd.f32 %v3568_v10, %v777_v17 }
 0x3c6   :  { %v809_v9 = vmax.f32 %v3639_v60, 0.0 }
 0x3c7   :  { %v808_v16 = vmax.f32 %v3646_v53, 0.0  ;;  %v2305_v41 = vpop.f32.mrb[30].mxu1  ;;  %2784 = vmatprep.subr.bf16.mxu0 %v2783_v11  ;;  %v843_v53 = vld [vmem:[%s4059_s11 + $0x70] sm:$0xff] }
 0x3c8   :  { %v3651_v6 = vadd.f32 %v2305_v41, %v3568_v10  ;;  %v787_v7 = vpop.f32.mrb[31].mxu1  ;;  %2786 = vmatpush3.bf16.msra.mxu0 %v2783_v11  ;;  %v823_v11 = vld [vmem:[%s4058_s9 + $0x58] sm:$0xff] }
 0x3c9   :  { %v2787_v49 = vpack.c.bf16 %v809_v9, %v808_v16  ;;  %v3658_v2 = vadd.f32 %v3568_v10, %v787_v7  ;;  %v822_v10 = vld [vmem:[%s4058_s9 + $0x50] sm:$0xff] }
 0x3ca   :  { %v811_v17 = vmax.f32 %v3651_v6, 0.0  ;;  %v2847_v7 = vpack.c.bf16 %v823_v11, %v822_v10 }
 0x3cb   :  { %v810_v4 = vmax.f32 %v3658_v2, 0.0  ;;  %2788 = vmatprep.subr.bf16.mxu0 %v2787_v49  ;;  %v1771_v2 = vld [vmem:[%s4060_s10] ss:$0 sm:$0xff] }
 0x3cc   :  { %2790 = vmatpush3.bf16.msra.mxu0 %v2787_v49  ;;  %v824_v49 = vld [vmem:[%s4058_s9 + $0x60] sm:$0xff] }
 0x3cd   :  { %v2791_v41 = vpack.c.bf16 %v811_v17, %v810_v4 }
 0x3cf   :  { %2792 = vmatprep.subr.bf16.mxu0 %v2791_v41 }
 0x3d0   :  { %2794 = vmatpush3.bf16.msra.mxu0 %v2791_v41  ;;  %v825_v41 = vld [vmem:[%s4058_s9 + $0x68] sm:$0xff] }
 0x3d3   :  { %2339 = vmatmul.mubr.f32.vlgmr.msra.gmra.mrb[32].mxu0 %v3169_v25  ;;  %v812_v25 = vld [vmem:[%s4058_s9] sm:$0xff] }
 0x3d4   :  { %2341 = vmatprep.mubr.f32.mxu0 %v3174_v26  ;;  %v813_v26 = vld [vmem:[%s4058_s9 + $0x8] sm:$0xff] }
 0x3d7   :  { %2342 = vmatmul.mubr.f32.gmra.mrb[34].mxu0 %v3181_v27  ;;  %v814_v27 = vld [vmem:[%s4058_s9 + $0x10] sm:$0xff] }
 0x3d8   :  { %2344 = vmatprep.mubr.f32.mxu0 %v3186_v28  ;;  %v2827_v28 = vpack.c.bf16 %v813_v26, %v812_v25  ;;  %v2851_v25 = vpack.c.bf16 %v825_v41, %v824_v49 }
 0x3da   :  { %2828 = vmatprep.subr.bf16.mxu0 %v2827_v28 }
 0x3db   :  { %2345 = vmatmul.mubr.f32.gmra.mrb[36].mxu0 %v3193_v29  ;;  %v815_v29 = vld [vmem:[%s4058_s9 + $0x18] sm:$0xff] }
 0x3dc   :  { %2347 = vmatprep.mubr.f32.mxu0 %v3198_v30  ;;  %v2831_v30 = vpack.c.bf16 %v815_v29, %v814_v27  ;;  %2830 = vmatpush3.bf16.msra.mxu0 %v2827_v28 }
 0x3de   :  { %2832 = vmatprep.subr.bf16.mxu0 %v2831_v30 }
 0x3df   :  { %2348 = vmatmul.mubr.f32.gmra.mrb[38].mxu0 %v3205_v31  ;;  %v816_v31 = vld [vmem:[%s4058_s9 + $0x20] sm:$0xff] }
 0x3e0   :  { %2350 = vmatprep.mubr.f32.mxu0 %v3210_v32  ;;  %v817_v32 = vld [vmem:[%s4058_s9 + $0x28] sm:$0xff]  ;;  %2834 = vmatpush3.bf16.msra.mxu0 %v2831_v30 }
 0x3e3   :  { %2351 = vmatmul.mubr.f32.gmra.mrb[40].mxu0 %v3217_v33  ;;  %v2835_v33 = vpack.c.bf16 %v817_v32, %v816_v31 }
 0x3e4   :  { %2353 = vmatprep.mubr.f32.mxu0 %v3222_v34  ;;  %v818_v34 = vld [vmem:[%s4058_s9 + $0x30] sm:$0xff] }
 0x3e5   :  { %2836 = vmatprep.subr.bf16.mxu0 %v2835_v33 }
 0x3e6   :  { %2838 = vmatpush3.bf16.msra.mxu0 %v2835_v33 }
 0x3e7   :  { %2354 = vmatmul.mubr.f32.gmra.mrb[42].mxu0 %v3229_v35  ;;  %v819_v35 = vld [vmem:[%s4058_s9 + $0x38] sm:$0xff] }
 0x3e8   :  { %2356 = vmatprep.mubr.f32.mxu0 %v3234_v36  ;;  %v2839_v36 = vpack.c.bf16 %v819_v35, %v818_v34 }
 0x3ea   :  { %2840 = vmatprep.subr.bf16.mxu0 %v2839_v36 }
 0x3eb   :  { %2357 = vmatmul.mubr.f32.gmra.mrb[44].mxu0 %v3241_v37  ;;  %v820_v37 = vld [vmem:[%s4058_s9 + $0x40] sm:$0xff] }
 0x3ec   :  { %2359 = vmatprep.mubr.f32.mxu0 %v3246_v38  ;;  %v821_v38 = vld [vmem:[%s4058_s9 + $0x48] sm:$0xff]  ;;  %2842 = vmatpush3.bf16.msra.mxu0 %v2839_v36 }
 0x3ef   :  { %2360 = vmatmul.mubr.f32.gmra.mrb[46].mxu0 %v3253_v39  ;;  %v2843_v39 = vpack.c.bf16 %v821_v38, %v820_v37 }
 0x3f1   :  { %2844 = vmatprep.subr.bf16.mxu0 %v2843_v39 }
 0x3f2   :  { %2846 = vmatpush3.bf16.msra.mxu0 %v2843_v39 }
 0x3f3   :  { %2848 = vmatprep.subr.bf16.mxu0 %v2847_v7 }
 0x3f6   :  { %2850 = vmatpush3.bf16.msra.mxu0 %v2847_v7 }
 0x3f7   :  { %2852 = vmatprep.subr.bf16.mxu0 %v2851_v25 }
 0x3fa   :  { %2854 = vmatpush3.bf16.msra.mxu0 %v2851_v25 }
 0x4a6   :  { %v2340_v26 = vpop.f32.mrb[32].mxu0 }
 0x4a7   :  { %v918_v27 = vadd.f32 %v2340_v26, %v3307_v62  ;;  %v912_v28 = vpop.f32.mrb[33].mxu0 }
 0x4a8   :  { %v913_v29 = vadd.f32 %v912_v28, %v3312_v63 }
 0x4a9   :  { %v992_v30 = vmax.f32 %v918_v27, 0.0 }
 0x4aa   :  { %v991_v31 = vmax.f32 %v913_v29, 0.0  ;;  %v2343_v32 = vpop.f32.mrb[34].mxu0 }
 0x4ab   :  { %v928_v33 = vadd.f32 %v2343_v32, %v3319_v15  ;;  %v922_v34 = vpop.f32.mrb[35].mxu0 }
 0x4ac   :  { %v2795_v35 = vpack.c.bf16 %v992_v30, %v991_v31  ;;  %v923_v36 = vadd.f32 %v922_v34, %v3324_v21 }
 0x4ad   :  { %v994_v37 = vmax.f32 %v928_v33, 0.0 }
 0x4ae   :  { %v993_v38 = vmax.f32 %v923_v36, 0.0  ;;  %v2346_v39 = vpop.f32.mrb[36].mxu0  ;;  %2796 = vmatprep.subr.bf16.mxu1 %v2795_v35 }
 0x4af   :  { %v938_v10 = vadd.f32 %v2346_v39, %v3331_v45  ;;  %v932_v11 = vpop.f32.mrb[37].mxu0  ;;  %2798 = vmatpush3.bf16.msra.mxu1 %v2795_v35 }
 0x4b0   :  { %v2799_v62 = vpack.c.bf16 %v994_v37, %v993_v38  ;;  %v933_v63 = vadd.f32 %v932_v11, %v3336_v48 }
 0x4b1   :  { %v996_v7 = vmax.f32 %v938_v10, 0.0 }
 0x4b2   :  { %v995_v49 = vmax.f32 %v933_v63, 0.0  ;;  %v2349_v41 = vpop.f32.mrb[38].mxu0  ;;  %2800 = vmatprep.subr.bf16.mxu1 %v2799_v62 }
 0x4b3   :  { %v948_v15 = vadd.f32 %v2349_v41, %v3343_v55  ;;  %v942_v25 = vpop.f32.mrb[39].mxu0  ;;  %2802 = vmatpush3.bf16.msra.mxu1 %v2799_v62 }
 0x4b4   :  { %v2803_v21 = vpack.c.bf16 %v996_v7, %v995_v49  ;;  %v943_v26 = vadd.f32 %v942_v25, %v3348_v57 }
 0x4b5   :  { %v998_v27 = vmax.f32 %v948_v15, 0.0 }
 0x4b6   :  { %v997_v28 = vmax.f32 %v943_v26, 0.0  ;;  %v2352_v29 = vpop.f32.mrb[40].mxu0  ;;  %2804 = vmatprep.subr.bf16.mxu1 %v2803_v21  ;;  %v4113_v26 = vld [vmem:[#allocation5_spill] sm:$0xff] }
 0x4b7   :  { %v958_v45 = vadd.f32 %v2352_v29, %v3355_v8  ;;  %v952_v30 = vpop.f32.mrb[41].mxu0  ;;  %2806 = vmatpush3.bf16.msra.mxu1 %v2803_v21  ;;  %v4111_v21 = vld [vmem:[#allocation3_spill] sm:$0xff]  ;;  %v4117_v29 = vld [vmem:[#allocation9_spill] sm:$0xff] }
 0x4b8   :  { %v2807_v48 = vpack.c.bf16 %v998_v27, %v997_v28  ;;  %v953_v31 = vadd.f32 %v952_v30, %v3360_v18  ;;  %v4115_v27 = vld [vmem:[#allocation7_spill] sm:$0xff]  ;;  %v4116_v28 = vld [vmem:[#allocation8_spill] sm:$0xff]  ;;  %v4121_v30 = vld [vmem:[#allocation13_spill] sm:$0xff] }
 0x4b9   :  { %v1000_v32 = vmax.f32 %v958_v45, 0.0  ;;  %v4118_v45 = vld [vmem:[#allocation10_spill] sm:$0xff] }
 0x4ba   :  { %v999_v33 = vmax.f32 %v953_v31, 0.0  ;;  %v2355_v34 = vpop.f32.mrb[42].mxu0  ;;  %2808 = vmatprep.subr.bf16.mxu1 %v2807_v48  ;;  %v826_v31 = vld [vmem:[%s4058_s9 + $0x70] sm:$0xff] }
 0x4bb   :  { %v968_v55 = vadd.f32 %v2355_v34, %v3367_v47  ;;  %v962_v35 = vpop.f32.mrb[43].mxu0  ;;  %2810 = vmatpush3.bf16.msra.mxu1 %v2807_v48  ;;  %v4122_v48 = vld [vmem:[#allocation14_spill] sm:$0xff] }
 0x4bc   :  { %v2811_v57 = vpack.c.bf16 %v1000_v32, %v999_v33  ;;  %v963_v36 = vadd.f32 %v962_v35, %v3372_v50  ;;  %v827_v32 = vld [vmem:[%s4058_s9 + $0x78] sm:$0xff]  ;;  %v829_v34 = vld [vmem:[%s4059_s11] sm:$0xff]  ;;  %v831_v35 = vld [vmem:[%s4059_s11 + $0x10] sm:$0xff] }
 0x4bd   :  { %v1002_v37 = vmax.f32 %v968_v55, 0.0  ;;  %v2855_v33 = vpack.c.bf16 %v827_v32, %v826_v31  ;;  %v830_v55 = vld [vmem:[%s4059_s11 + $0x8] sm:$0xff] }
 0x4be   :  { %v1001_v38 = vmax.f32 %v963_v36, 0.0  ;;  %v2358_v39 = vpop.f32.mrb[44].mxu0  ;;  %2812 = vmatprep.subr.bf16.mxu1 %v2811_v57  ;;  %v832_v36 = vld [vmem:[%s4059_s11 + $0x18] sm:$0xff] }
 0x4bf   :  { %v978_v8 = vadd.f32 %v2358_v39, %v3379_v59  ;;  %v972_v10 = vpop.f32.mrb[45].mxu0  ;;  %2814 = vmatpush3.bf16.msra.mxu1 %v2811_v57  ;;  %2856 = vmatprep.subr.bf16.mxu0 %v2855_v33  ;;  %v2859_v57 = vpack.c.bf16 %v830_v55, %v829_v34  ;;  %v834_v39 = vld [vmem:[%s4059_s11 + $0x28] sm:$0xff] }
 0x4c0   :  { %v2815_v18 = vpack.c.bf16 %v1002_v37, %v1001_v38  ;;  %v973_v11 = vadd.f32 %v972_v10, %v3384_v61  ;;  %v4110_v61 = vld [vmem:[#allocation2_spill] sm:$0xff]  ;;  %2858 = vmatpush3.bf16.msra.mxu0 %v2855_v33  ;;  %v2863_v37 = vpack.c.bf16 %v832_v36, %v831_v35  ;;  %v835_v10 = vld [vmem:[%s4059_s11 + $0x30] sm:$0xff] }
 0x4c1   :  { %v1004_v62 = vmax.f32 %v978_v8, 0.0  ;;  %v833_v38 = vld [vmem:[%s4059_s11 + $0x20] sm:$0xff] }
 0x4c2   :  { %v1003_v63 = vmax.f32 %v973_v11, 0.0  ;;  %v2361_v7 = vpop.f32.mrb[46].mxu0  ;;  %2816 = vmatprep.subr.bf16.mxu1 %v2815_v18  ;;  %v2867_v8 = vpack.c.bf16 %v834_v39, %v833_v38 }
 0x4c3   :  { %v988_v47 = vadd.f32 %v2361_v7, %v3391_v43  ;;  %v982_v49 = vpop.f32.mrb[47].mxu0  ;;  %2818 = vmatpush3.bf16.msra.mxu1 %v2815_v18  ;;  %v4112_v43 = vld [vmem:[#allocation4_spill] sm:$0xff]  ;;  %v836_v18 = vld [vmem:[%s4059_s11 + $0x38] sm:$0xff] }
 0x4c4   :  { %v2819_v50 = vpack.c.bf16 %v1004_v62, %v1003_v63  ;;  %v983_v41 = vadd.f32 %v982_v49, %v3396_v46  ;;  %v4114_v46 = vld [vmem:[#allocation6_spill] sm:$0xff]  ;;  %v2871_v11 = vpack.c.bf16 %v836_v18, %v835_v10  ;;  %v838_v63 = vld [vmem:[%s4059_s11 + $0x48] sm:$0xff]  ;;  %v840_v49 = vld [vmem:[%s4059_s11 + $0x58] sm:$0xff] }
 0x4c5   :  { %v1006_v15 = vmax.f32 %v988_v47, 0.0  ;;  %v837_v62 = vld [vmem:[%s4059_s11 + $0x40] sm:$0xff]  ;;  %v839_v47 = vld [vmem:[%s4059_s11 + $0x50] sm:$0xff] }
 0x4c6   :  { %v1005_v25 = vmax.f32 %v983_v41, 0.0  ;;  %2820 = vmatprep.subr.bf16.mxu1 %v2819_v50  ;;  %v2875_v7 = vpack.c.bf16 %v838_v63, %v837_v62  ;;  %v841_v41 = vld [vmem:[%s4059_s11 + $0x60] sm:$0xff] }
 0x4c7   :  { %2822 = vmatpush3.bf16.msra.mxu1 %v2819_v50  ;;  %v2879_v50 = vpack.c.bf16 %v840_v49, %v839_v47 }
 0x4c8   :  { %v2823_v59 = vpack.c.bf16 %v1006_v15, %v1005_v25  ;;  %v842_v15 = vld [vmem:[%s4059_s11 + $0x68] sm:$0xff] }
 0x4c9   :  { %v2883_v25 = vpack.c.bf16 %v842_v15, %v841_v41 }
 0x4ca   :  { %2824 = vmatprep.subr.bf16.mxu1 %v2823_v59 }
 0x4cb   :  { %2826 = vmatpush3.bf16.msra.mxu1 %v2823_v59 }
 0x4cc   :  { %2860 = vmatprep.subr.bf16.mxu1 %v2859_v57 }
 0x4ce   :  { %2395 = vmatmul.mubr.f32.vlgmr.msra.gmra.mrb[32].mxu1 %v3403_v5  ;;  %v4119_v5 = vld [vmem:[#allocation11_spill] sm:$0xff] }
 0x4cf   :  { %2397 = vmatprep.mubr.f32.mxu1 %v3408_v12  ;;  %v4120_v12 = vld [vmem:[#allocation12_spill] sm:$0xff]  ;;  %2862 = vmatpush3.bf16.msra.mxu1 %v2859_v57 }
 0x4d0   :  { %2864 = vmatprep.subr.bf16.mxu1 %v2863_v37 }
 0x4d2   :  { %2398 = vmatmul.mubr.f32.gmra.mrb[34].mxu1 %v4110_v61 }
 0x4d3   :  { %2400 = vmatprep.mubr.f32.mxu1 %v4111_v21  ;;  %2866 = vmatpush3.bf16.msra.mxu1 %v2863_v37 }
 0x4d4   :  { %2868 = vmatprep.subr.bf16.mxu1 %v2867_v8 }
 0x4d6   :  { %2401 = vmatmul.mubr.f32.gmra.mrb[36].mxu1 %v4112_v43 }
 0x4d7   :  { %2403 = vmatprep.mubr.f32.mxu1 %v4113_v26  ;;  %2870 = vmatpush3.bf16.msra.mxu1 %v2867_v8 }
 0x4d8   :  { %2872 = vmatprep.subr.bf16.mxu1 %v2871_v11 }
 0x4da   :  { %2404 = vmatmul.mubr.f32.gmra.mrb[38].mxu1 %v4114_v46 }
 0x4db   :  { %2406 = vmatprep.mubr.f32.mxu1 %v4115_v27  ;;  %2874 = vmatpush3.bf16.msra.mxu1 %v2871_v11 }
 0x4dc   :  { %2876 = vmatprep.subr.bf16.mxu1 %v2875_v7 }
 0x4de   :  { %2407 = vmatmul.mubr.f32.gmra.mrb[40].mxu1 %v4116_v28 }
 0x4df   :  { %2409 = vmatprep.mubr.f32.mxu1 %v4117_v29  ;;  %2878 = vmatpush3.bf16.msra.mxu1 %v2875_v7 }
 0x4e0   :  { %2880 = vmatprep.subr.bf16.mxu1 %v2879_v50 }
 0x4e2   :  { %2410 = vmatmul.mubr.f32.gmra.mrb[42].mxu1 %v4118_v45 }
 0x4e3   :  { %2412 = vmatprep.mubr.f32.mxu1 %v4119_v5  ;;  %2882 = vmatpush3.bf16.msra.mxu1 %v2879_v50 }
 0x4e4   :  { %2884 = vmatprep.subr.bf16.mxu1 %v2883_v25 }
 0x4e6   :  { %2413 = vmatmul.mubr.f32.gmra.mrb[44].mxu1 %v4120_v12 }
 0x4e7   :  { %2415 = vmatprep.mubr.f32.mxu1 %v4121_v30  ;;  %2886 = vmatpush3.bf16.msra.mxu1 %v2883_v25 }
 0x4ea   :  { %2416 = vmatmul.mubr.f32.gmra.mrb[46].mxu1 %v4122_v48 }
 0x5a1   :  { %v2396_v59 = vpop.f32.mrb[32].mxu1 }
 0x5a2   :  { %v1073_v61 = vpop.f32.mrb[33].mxu1  ;;  %v1153_v43 = vadd.f32 %v2396_v59, %v797_v13 }
 0x5a3   :  { %v1152_v21 = vadd.f32 %v1073_v61, %v796_v14 }
 0x5a5   :  { %v2399_v26 = vpop.f32.mrb[34].mxu1  ;;  %2450 = vmatprep.mubr.f32.mxu0 %v1152_v21 }
 0x5a6   :  { %v1083_v46 = vpop.f32.mrb[35].mxu1  ;;  %2451 = vmatmul.mubr.f32.vlgmr.msra.gmra.mrb[48].mxu0 %v1153_v43  ;;  %v1155_v28 = vadd.f32 %v2399_v26, %v799_v22 }
 0x5a7   :  { %v1154_v27 = vadd.f32 %v1083_v46, %v798_v23 }
 0x5a9   :  { %v2402_v29 = vpop.f32.mrb[36].mxu1  ;;  %2453 = vmatprep.mubr.f32.mxu0 %v1154_v27 }
 0x5aa   :  { %v1093_v45 = vpop.f32.mrb[37].mxu1  ;;  %2454 = vmatmul.mubr.f32.gmra.mrb[50].mxu0 %v1155_v28  ;;  %v1157_v56 = vadd.f32 %v2402_v29, %v801_v0 }
 0x5ab   :  { %v1156_v20 = vadd.f32 %v1093_v45, %v800_v1 }
 0x5ad   :  { %v2405_v13 = vpop.f32.mrb[38].mxu1  ;;  %2456 = vmatprep.mubr.f32.mxu0 %v1156_v20 }
 0x5ae   :  { %v1103_v14 = vpop.f32.mrb[39].mxu1  ;;  %2457 = vmatmul.mubr.f32.gmra.mrb[52].mxu0 %v1157_v56  ;;  %v1159_v22 = vadd.f32 %v2405_v13, %v4124_v40 }
 0x5af   :  { %v1158_v23 = vadd.f32 %v1103_v14, %v4123_v19 }
 0x5b1   :  { %v2408_v5 = vpop.f32.mrb[40].mxu1  ;;  %2459 = vmatprep.mubr.f32.mxu0 %v1158_v23 }
 0x5b2   :  { %v1113_v12 = vpop.f32.mrb[41].mxu1  ;;  %2460 = vmatmul.mubr.f32.gmra.mrb[54].mxu0 %v1159_v22  ;;  %v1161_v0 = vadd.f32 %v2408_v5, %v4126_v58 }
 0x5b3   :  { %v1160_v1 = vadd.f32 %v1113_v12, %v4125_v3 }
 0x5b5   :  { %v2411_v30 = vpop.f32.mrb[42].mxu1  ;;  %2462 = vmatprep.mubr.f32.mxu0 %v1160_v1 }
 0x5b6   :  { %v1123_v48 = vpop.f32.mrb[43].mxu1  ;;  %2463 = vmatmul.mubr.f32.gmra.mrb[56].mxu0 %v1161_v0  ;;  %v1163_v32 = vadd.f32 %v2411_v30, %v4128_v52  ;;  %v1573_v52 = vld [vmem:[%s4061_s13] sm:$0xff] }
 0x5b7   :  { %v1162_v31 = vadd.f32 %v1123_v48, %v4127_v24  ;;  %v2966_v24 = vmov 0.0|0.0  }
 0x5b8   :  { %2891 = vmatprep.subr.bf16.mxu0 %v2966_v24 }
 0x5b9   :  { %v2414_v33 = vpop.f32.mrb[44].mxu1  ;;  %2465 = vmatprep.mubr.f32.mxu0 %v1162_v31  ;;  %v2968_v31 = vmov 0.0  }
 0x5ba   :  { %v1133_v34 = vpop.f32.mrb[45].mxu1  ;;  %2466 = vmatmul.mubr.f32.gmra.mrb[58].mxu0 %v1163_v32  ;;  %v1165_v42 = vadd.f32 %v2414_v33, %v809_v9  ;;  %v1574_v32 = vld [vmem:[%s4061_s13 + $0x8] sm:$0xff]  ;;  %v1575_v33 = vld [vmem:[%s4061_s13 + $0x10] sm:$0xff] }
 0x5bb   :  { %v1164_v54 = vadd.f32 %v1133_v34, %v808_v16  ;;  %v844_v16 = vld [vmem:[%s4059_s11 + $0x78] sm:$0xff]  ;;  %v2916_v34 = vpack.c.bf16 %v1574_v32, %v1573_v52 }
 0x5bc   :  { %v2887_v60 = vpack.c.bf16 %v844_v16, %v843_v53  ;;  %v1580_v53 = vld [vmem:[%s4061_s13 + $0x38] sm:$0xff] }
 0x5bd   :  { %v2417_v55 = vpop.f32.mrb[46].mxu1  ;;  %2468 = vmatprep.mubr.f32.mxu0 %v1164_v54  ;;  %v1576_v54 = vld [vmem:[%s4061_s13 + $0x18] sm:$0xff] }
 0x5be   :  { %v1143_v35 = vpop.f32.mrb[47].mxu1  ;;  %2469 = vmatmul.mubr.f32.gmra.mrb[60].mxu0 %v1165_v42  ;;  %v1167_v51 = vadd.f32 %v2417_v55, %v811_v17  ;;  %2888 = vmatprep.subr.bf16.mxu1 %v2887_v60  ;;  %v2919_v42 = vpack.c.bf16 %v1576_v54, %v1575_v33  ;;  %v1577_v55 = vld [vmem:[%s4061_s13 + $0x20] sm:$0xff] }
 0x5bf   :  { %v1166_v44 = vadd.f32 %v1143_v35, %v810_v4  ;;  %2890 = vmatpush3.bf16.msra.mxu1 %v2887_v60  ;;  %v1578_v35 = vld [vmem:[%s4061_s13 + $0x28] sm:$0xff]  ;;  %v1581_v60 = vld [vmem:[%s4061_s13 + $0x40] sm:$0xff] }
 0x5c0   :  { %2915 = vmatprep.subr.bf16.mxu1 %v2966_v24  ;;  %v1590_v54 = vld [vmem:[%s4065_s15] sm:$0xff] }
 0x5c1   :  { %2471 = vmatprep.mubr.f32.mxu0 %v1166_v44  ;;  %v2922_v44 = vpack.c.bf16 %v1578_v35, %v1577_v55  ;;  %v1592_v55 = vld [vmem:[%s4065_s15 + $0x10] sm:$0xff] }
 0x5c2   :  { %2472 = vmatmul.mubr.f32.gmra.mrb[62].mxu0 %v1167_v51  ;;  %v1579_v51 = vld [vmem:[%s4061_s13 + $0x30] sm:$0xff] }
 0x5c3   :  { %2562 = vmatprep.mubr.msk.f32.mxu0 %vm2967_vm0, %v2968_v31  ;;  %v2925_v16 = vpack.c.bf16 %v1580_v53, %v1579_v51  ;;  %v1595_v53 = vld [vmem:[%s4065_s15 + $0x28] sm:$0xff] }
 0x679   :  { %v2452_v4 = vpop.f32.mrb[48].mxu0 }
 0x67a   :  { %v1246_v6 = vadd.f32 %v2452_v4, %v1771_v2  ;;  %v1240_v9 = vpop.f32.mrb[49].mxu0 }
 0x67b   :  { %v1241_v17 = vadd.f32 %v1771_v2, %v1240_v9  ;;  %v1584_v9 = vld [vmem:[%s4061_s13 + $0x58] sm:$0xff] }
 0x67c   :  { %v1320_v37 = vmax.f32 %v1246_v6, 0.0  ;;  %v1583_v6 = vld [vmem:[%s4061_s13 + $0x50] sm:$0xff] }
 0x67d   :  { %v1319_v57 = vmax.f32 %v1241_v17, 0.0  ;;  %v2455_v36 = vpop.f32.mrb[50].mxu0  ;;  %v2931_v17 = vpack.c.bf16 %v1584_v9, %v1583_v6  ;;  %v1598_v6 = vld [vmem:[%s4065_s15 + $0x40] sm:$0xff]  ;;  %v1599_v9 = vld [vmem:[%s4065_s15 + $0x48] sm:$0xff] }
 0x67e   :  { %v1256_v38 = vadd.f32 %v2455_v36, %v1771_v2  ;;  %v1250_v39 = vpop.f32.mrb[51].mxu0  ;;  %v1586_v36 = vld [vmem:[%s4061_s13 + $0x68] sm:$0xff] }
 0x67f   :  { %v1251_v8 = vadd.f32 %v1771_v2, %v1250_v39  ;;  %2506 = vmatprep.mubr.f32.mxu1 %v1319_v57  ;;  %v1585_v57 = vld [vmem:[%s4061_s13 + $0x60] sm:$0xff]  ;;  %v1588_v39 = vld [vmem:[%s4061_s13 + $0x78] sm:$0xff] }
 0x680   :  { %2507 = vmatmul.mubr.f32.vlgmr.msra.gmra.mrb[48].mxu1 %v1320_v37  ;;  %v1322_v11 = vmax.f32 %v1256_v38, 0.0  ;;  %v2934_v37 = vpack.c.bf16 %v1586_v36, %v1585_v57  ;;  %v1587_v38 = vld [vmem:[%s4061_s13 + $0x70] sm:$0xff]  ;;  %v1601_v36 = vld [vmem:[%s4065_s15 + $0x58] sm:$0xff] }
 0x681   :  { %v1321_v10 = vmax.f32 %v1251_v8, 0.0  ;;  %v2458_v18 = vpop.f32.mrb[52].mxu0  ;;  %2917 = vmatpush3.bf16.msra.mxu1 %v2916_v34  ;;  %v2937_v8 = vpack.c.bf16 %v1588_v39, %v1587_v38  ;;  %v1502_v34 = vld [vmem:[%s4064_s4] sm:$0xff]  ;;  %v1600_v57 = vld [vmem:[%s4065_s15 + $0x50] sm:$0xff]  ;;  %v1603_v39 = vld [vmem:[%s4065_s15 + $0x68] sm:$0xff] }
 0x682   :  { %v1266_v62 = vadd.f32 %v2458_v18, %v1771_v2  ;;  %v1260_v63 = vpop.f32.mrb[53].mxu0  ;;  %2918 = vmatprep.subr.bf16.mxu1 %v2966_v24  ;;  %v1602_v38 = vld [vmem:[%s4065_s15 + $0x60] sm:$0xff] }
 0x683   :  { %v1261_v7 = vadd.f32 %v1771_v2, %v1260_v63  ;;  %2509 = vmatprep.mubr.f32.mxu1 %v1321_v10  ;;  %v3907_v10 = vld [vmem:[%s4062_s12] ss:$0 sm:$0xff] }
 0x684   :  { %2510 = vmatmul.mubr.f32.gmra.mrb[50].mxu1 %v1322_v11  ;;  %v1324_v50 = vmax.f32 %v1266_v62, 0.0 }
 0x685   :  { %v1323_v47 = vmax.f32 %v1261_v7, 0.0  ;;  %v2461_v49 = vpop.f32.mrb[54].mxu0  ;;  %2920 = vmatpush3.bf16.msra.mxu1 %v2919_v42  ;;  %v1591_v42 = vld [vmem:[%s4065_s15 + $0x8] sm:$0xff] }
 0x686   :  { %v1276_v41 = vadd.f32 %v2461_v49, %v1771_v2  ;;  %v1270_v15 = vpop.f32.mrb[55].mxu0  ;;  %2921 = vmatprep.subr.bf16.mxu1 %v2966_v24  ;;  %v2940_v35 = vpack.c.bf16 %v1591_v42, %v1590_v54 }
 0x687   :  { %v1271_v25 = vadd.f32 %v1771_v2, %v1270_v15  ;;  %2512 = vmatprep.mubr.f32.mxu1 %v1323_v47 }
 0x688   :  { %2513 = vmatmul.mubr.f32.gmra.mrb[52].mxu1 %v1324_v50  ;;  %v1326_v21 = vmax.f32 %v1276_v41, 0.0 }
 0x689   :  { %v1325_v59 = vmax.f32 %v1271_v25, 0.0  ;;  %v2464_v61 = vpop.f32.mrb[56].mxu0  ;;  %2923 = vmatpush3.bf16.msra.mxu1 %v2922_v44  ;;  %v1593_v44 = vld [vmem:[%s4065_s15 + $0x18] sm:$0xff] }
 0x68a   :  { %v1286_v43 = vadd.f32 %v2464_v61, %v1771_v2  ;;  %v1280_v26 = vpop.f32.mrb[57].mxu0  ;;  %2924 = vmatprep.subr.bf16.mxu1 %v2966_v24  ;;  %v2943_v51 = vpack.c.bf16 %v1593_v44, %v1592_v55 }
 0x68b   :  { %v1281_v46 = vadd.f32 %v1771_v2, %v1280_v26  ;;  %2515 = vmatprep.mubr.f32.mxu1 %v1325_v59 }
 0x68c   :  { %2516 = vmatmul.mubr.f32.gmra.mrb[54].mxu1 %v1326_v21  ;;  %v1328_v29 = vmax.f32 %v1286_v43, 0.0 }
 0x68d   :  { %v1327_v27 = vmax.f32 %v1281_v46, 0.0  ;;  %v2467_v28 = vpop.f32.mrb[58].mxu0  ;;  %2926 = vmatpush3.bf16.msra.mxu1 %v2925_v16 }
 0x68e   :  { %v1296_v45 = vadd.f32 %v2467_v28, %v1771_v2  ;;  %v1290_v20 = vpop.f32.mrb[59].mxu0  ;;  %2927 = vmatprep.subr.bf16.mxu1 %v2966_v24 }
 0x68f   :  { %v1291_v56 = vadd.f32 %v1771_v2, %v1290_v20  ;;  %2518 = vmatprep.mubr.f32.mxu1 %v1327_v27 }
 0x690   :  { %2519 = vmatmul.mubr.f32.gmra.mrb[56].mxu1 %v1328_v29  ;;  %v1330_v19 = vmax.f32 %v1296_v45, 0.0 }
 0x691   :  { %v1329_v13 = vmax.f32 %v1291_v56, 0.0  ;;  %v2470_v14 = vpop.f32.mrb[60].mxu0 }
 0x692   :  { %v1306_v23 = vadd.f32 %v2470_v14, %v1771_v2  ;;  %v1300_v40 = vpop.f32.mrb[61].mxu0 }
 0x693   :  { %v1301_v22 = vadd.f32 %v1771_v2, %v1300_v40  ;;  %2521 = vmatprep.mubr.f32.mxu1 %v1329_v13 }
 0x694   :  { %2522 = vmatmul.mubr.f32.gmra.mrb[58].mxu1 %v1330_v19  ;;  %v1332_v3 = vmax.f32 %v1306_v23, 0.0 }
 0x695   :  { %v1331_v5 = vmax.f32 %v1301_v22, 0.0  ;;  %v2473_v12 = vpop.f32.mrb[62].mxu0 }
 0x696   :  { %v1316_v1 = vadd.f32 %v2473_v12, %v1771_v2  ;;  %v1310_v58 = vpop.f32.mrb[63].mxu0 }
 0x697   :  { %v1311_v0 = vadd.f32 %v1771_v2, %v1310_v58  ;;  %2524 = vmatprep.mubr.f32.mxu1 %v1331_v5  ;;  %v1582_v2 = vld [vmem:[%s4061_s13 + $0x48] sm:$0xff] }
 0x698   :  { %2525 = vmatmul.mubr.f32.gmra.mrb[60].mxu1 %v1332_v3  ;;  %v1334_v48 = vmax.f32 %v1316_v1, 0.0  ;;  %v2928_v4 = vpack.c.bf16 %v1582_v2, %v1581_v60  ;;  %v1596_v60 = vld [vmem:[%s4065_s15 + $0x30] sm:$0xff]  ;;  %v1597_v2 = vld [vmem:[%s4065_s15 + $0x38] sm:$0xff] }
 0x699   :  { %v1333_v30 = vmax.f32 %v1311_v0, 0.0 }
 0x69a   :  { %2929 = vmatpush3.bf16.msra.mxu1 %v2928_v4  ;;  %v2949_v4 = vpack.c.bf16 %v1597_v2, %v1596_v60 }
 0x69b   :  { %2527 = vmatprep.mubr.f32.mxu1 %v1333_v30  ;;  %2930 = vmatprep.subr.bf16.mxu1 %v2966_v24 }
 0x69c   :  { %2528 = vmatmul.mubr.f32.gmra.mrb[62].mxu1 %v1334_v48 }
 0x69d   :  { %2597 = vmatprep.mubr.msk.f32.mxu1 %vm2967_vm0, %v2968_v31 }
 0x69e   :  { %2932 = vmatpush3.bf16.msra.mxu1 %v2931_v17  ;;  %v2952_v17 = vpack.c.bf16 %v1599_v9, %v1598_v6 }
 0x69f   :  { %2933 = vmatprep.subr.bf16.mxu1 %v2966_v24 }
 0x6a2   :  { %2935 = vmatpush3.bf16.msra.mxu1 %v2934_v37  ;;  %v2955_v37 = vpack.c.bf16 %v1601_v36, %v1600_v57 }
 0x6a3   :  { %2936 = vmatprep.subr.bf16.mxu1 %v2966_v24 }
 0x6a6   :  { %2938 = vmatpush3.bf16.msra.mxu1 %v2937_v8  ;;  %v2958_v8 = vpack.c.bf16 %v1603_v39, %v1602_v38 }
 0x753   :  { %v2508_v18 = vpop.f32.mrb[48].mxu1 }
 0x754   :  { %v1413_v11 = vadd.f32 %v2508_v18, %v3907_v10  ;;  %v1407_v62 = vpop.f32.mrb[49].mxu1 }
 0x755   :  { %v1408_v63 = vadd.f32 %v3907_v10, %v1407_v62  ;;  %v1605_v62 = vld [vmem:[%s4065_s15 + $0x78] sm:$0xff] }
 0x756   :  { %1487 = vst [vmem:[%s4063_s17 + $0x8] sm:$0xff] %v1413_v11 }
 0x757   :  { %1486 = vst [vmem:[%s4063_s17] sm:$0xff] %v1408_v63  ;;  %v2892_v7 = vpack.c.bf16 %v1413_v11, %v1408_v63  ;;  %v2511_v47 = vpop.f32.mrb[50].mxu1  ;;  %v1604_v11 = vld [vmem:[%s4065_s15 + $0x70] sm:$0xff] }
 0x758   :  { %v1423_v49 = vadd.f32 %v2511_v47, %v3907_v10  ;;  %v1417_v50 = vpop.f32.mrb[51].mxu1  ;;  %v2961_v63 = vpack.c.bf16 %v1605_v62, %v1604_v11 }
 0x759   :  { %v1418_v41 = vadd.f32 %v3907_v10, %v1417_v50  ;;  %2893 = vmatpush3.bf16.msra.mxu0 %v2892_v7  ;;  %v1773_v7 = vld [vmem:[%s4066_s14] ss:$0 sm:$0xff] }
 0x75a   :  { %1489 = vst [vmem:[%s4063_s17 + $0x18] sm:$0xff] %v1423_v49  ;;  %2894 = vmatprep.subr.bf16.mxu0 %v2966_v24 }
 0x75b   :  { %1488 = vst [vmem:[%s4063_s17 + $0x10] sm:$0xff] %v1418_v41  ;;  %v2895_v15 = vpack.c.bf16 %v1423_v49, %v1418_v41  ;;  %v2514_v25 = vpop.f32.mrb[52].mxu1  ;;  %v1774_v41 = vld [vmem:[%s4067_s16] ss:$0 sm:$0xff] }
 0x75c   :  { %v1433_v59 = vadd.f32 %v2514_v25, %v3907_v10  ;;  %v1427_v61 = vpop.f32.mrb[53].mxu1 }
 0x75d   :  { %v1428_v21 = vadd.f32 %v3907_v10, %v1427_v61  ;;  %2896 = vmatpush3.bf16.msra.mxu0 %v2895_v15 }
 0x75e   :  { %1491 = vst [vmem:[%s4063_s17 + $0x28] sm:$0xff] %v1433_v59  ;;  %2897 = vmatprep.subr.bf16.mxu0 %v2966_v24 }
 0x75f   :  { %1490 = vst [vmem:[%s4063_s17 + $0x20] sm:$0xff] %v1428_v21  ;;  %v2898_v43 = vpack.c.bf16 %v1433_v59, %v1428_v21  ;;  %v2517_v26 = vpop.f32.mrb[54].mxu1 }
 0x760   :  { %v1443_v46 = vadd.f32 %v2517_v26, %v3907_v10  ;;  %v1437_v27 = vpop.f32.mrb[55].mxu1 }
 0x761   :  { %v1438_v28 = vadd.f32 %v3907_v10, %v1437_v27  ;;  %2899 = vmatpush3.bf16.msra.mxu0 %v2898_v43 }
 0x762   :  { %1493 = vst [vmem:[%s4063_s17 + $0x38] sm:$0xff] %v1443_v46  ;;  %2900 = vmatprep.subr.bf16.mxu0 %v2966_v24 }
 0x763   :  { %1492 = vst [vmem:[%s4063_s17 + $0x30] sm:$0xff] %v1438_v28  ;;  %v2901_v29 = vpack.c.bf16 %v1443_v46, %v1438_v28  ;;  %v2520_v45 = vpop.f32.mrb[56].mxu1 }
 0x764   :  { %v1453_v20 = vadd.f32 %v2520_v45, %v3907_v10  ;;  %v1447_v56 = vpop.f32.mrb[57].mxu1 }
 0x765   :  { %v1448_v13 = vadd.f32 %v3907_v10, %v1447_v56  ;;  %2902 = vmatpush3.bf16.msra.mxu0 %v2901_v29 }
 0x766   :  { %1495 = vst [vmem:[%s4063_s17 + $0x48] sm:$0xff] %v1453_v20  ;;  %2903 = vmatprep.subr.bf16.mxu0 %v2966_v24 }
 0x767   :  { %1494 = vst [vmem:[%s4063_s17 + $0x40] sm:$0xff] %v1448_v13  ;;  %v2904_v14 = vpack.c.bf16 %v1453_v20, %v1448_v13  ;;  %v2523_v19 = vpop.f32.mrb[58].mxu1 }
 0x768   :  { %v1463_v23 = vadd.f32 %v2523_v19, %v3907_v10  ;;  %v1457_v40 = vpop.f32.mrb[59].mxu1 }
 0x769   :  { %v1458_v22 = vadd.f32 %v3907_v10, %v1457_v40  ;;  %2905 = vmatpush3.bf16.msra.mxu0 %v2904_v14 }
 0x76a   :  { %1497 = vst [vmem:[%s4063_s17 + $0x58] sm:$0xff] %v1463_v23  ;;  %2906 = vmatprep.subr.bf16.mxu0 %v2966_v24 }
 0x76b   :  { %1496 = vst [vmem:[%s4063_s17 + $0x50] sm:$0xff] %v1458_v22  ;;  %v2907_v5 = vpack.c.bf16 %v1463_v23, %v1458_v22  ;;  %v2526_v12 = vpop.f32.mrb[60].mxu1 }
 0x76c   :  { %v1473_v3 = vadd.f32 %v2526_v12, %v3907_v10  ;;  %v1467_v1 = vpop.f32.mrb[61].mxu1 }
 0x76d   :  { %v1468_v58 = vadd.f32 %v3907_v10, %v1467_v1  ;;  %2908 = vmatpush3.bf16.msra.mxu0 %v2907_v5 }
 0x76e   :  { %1499 = vst [vmem:[%s4063_s17 + $0x68] sm:$0xff] %v1473_v3  ;;  %2909 = vmatprep.subr.bf16.mxu0 %v2966_v24 }
 0x76f   :  { %1498 = vst [vmem:[%s4063_s17 + $0x60] sm:$0xff] %v1468_v58  ;;  %v2910_v0 = vpack.c.bf16 %v1473_v3, %v1468_v58  ;;  %v2529_v30 = vpop.f32.mrb[62].mxu1 }
 0x770   :  { %v1483_v48 = vadd.f32 %v2529_v30, %v3907_v10  ;;  %v1477_v52 = vpop.f32.mrb[63].mxu1 }
 0x771   :  { %v1478_v32 = vadd.f32 %v3907_v10, %v1477_v52  ;;  %2911 = vmatpush3.bf16.msra.mxu0 %v2910_v0 }
 0x772   :  { %1501 = vst [vmem:[%s4063_s17 + $0x78] sm:$0xff] %v1483_v48  ;;  %2912 = vmatprep.subr.bf16.mxu0 %v2966_v24 }
 0x773   :  { %1500 = vst [vmem:[%s4063_s17 + $0x70] sm:$0xff] %v1478_v32  ;;  %v2913_v33 = vpack.c.bf16 %v1483_v48, %v1478_v32 }
 0x775   :  { %2914 = vmatpush3.bf16.msra.mxu0 %v2913_v33 }
 0x776   :  { %2939 = vmatprep.subr.bf16.mxu0 %v2966_v24 }
 0x778   :  { %2563 = vmatmul.mubr.f32.vlgmr.msra.gmra.mrb[64].mxu0 %v1502_v34 }
 0x779   :  { %2632 = vmatprep.mubr.msk.f32.mxu0 %vm2967_vm0, %v2968_v31  ;;  %2941 = vmatpush3.bf16.msra.mxu0 %v2940_v35  ;;  %v1594_v31 = vld [vmem:[%s4065_s15 + $0x20] sm:$0xff] }
 0x77a   :  { %2942 = vmatprep.subr.bf16.mxu0 %v2966_v24  ;;  %v2946_v16 = vpack.c.bf16 %v1595_v53, %v1594_v31 }
 0x77d   :  { %2944 = vmatpush3.bf16.msra.mxu0 %v2943_v51 }
 0x77e   :  { %2945 = vmatprep.subr.bf16.mxu0 %v2966_v24 }
 0x781   :  { %2947 = vmatpush3.bf16.msra.mxu0 %v2946_v16 }
 0x782   :  { %2948 = vmatprep.subr.bf16.mxu0 %v2966_v24 }
 0x785   :  { %2950 = vmatpush3.bf16.msra.mxu0 %v2949_v4 }
 0x786   :  { %2951 = vmatprep.subr.bf16.mxu0 %v2966_v24 }
 0x789   :  { %2953 = vmatpush3.bf16.msra.mxu0 %v2952_v17 }
 0x78a   :  { %2954 = vmatprep.subr.bf16.mxu0 %v2966_v24 }
 0x78d   :  { %2956 = vmatpush3.bf16.msra.mxu0 %v2955_v37 }
 0x78e   :  { %2957 = vmatprep.subr.bf16.mxu0 %v2966_v24 }
 0x791   :  { %2959 = vmatpush3.bf16.msra.mxu0 %v2958_v8 }
 0x792   :  { %2960 = vmatprep.subr.bf16.mxu0 %v2966_v24 }
 0x795   :  { %2962 = vmatpush3.bf16.msra.mxu0 %v2961_v63 }
 0x84b   :  { %v1569_v10 = vpop.f32.mrb[64].mxu0 }
 0x84c   :  { %v2564_v18 = vpop.f32.mrb[65].mxu0  ;;  %2598 = vmatmul.mubr.f32.vlgmr.msra.gmra.mrb[64].mxu1 %v1569_v10 }
 0x91f   :  { %v1679_v47 = vpop.f32.mrb[64].mxu1 }
 0x920   :  { %v1680_v49 = vadd.f32 %v1773_v7, %v1679_v47  ;;  %v2599_v24 = vpop.f32.mrb[65].mxu1 }
 0x922   :  { %v1683_v50 = vmax.f32 %v1680_v49, 0.0 }
 0x924   :  { %2633 = vmatmul.mubr.f32.vlgmr.msra.gmra.mrb[66].mxu0 %v1683_v50 }
 0x9f7   :  { %v1756_v15 = vpop.f32.mrb[66].mxu0 }
 0x9f8   :  { %v1757_v25 = vadd.f32 %v1774_v41, %v1756_v15  ;;  %v2634_v59 = vpop.f32.mrb[67].mxu0 }
 0x9fa   :  { %1760 = vst [vmem:[%s4068_s18] sm:$0xff] %v1757_v25 }

</bundles_post_ra>
